<compile_context>
chip_gen: v7x
topology: tpu7x:2x2x1
jax: 0.10.0
libtpu: 0.0.40
codegen_flags: <defaults>
</compile_context>

<pallas_src>
import jax
import jax.numpy as jnp
from jax.experimental import pallas as pl
from jax.experimental.pallas import tpu as pltpu

INPUT_DIM = 3
HIDDEN_DIM = 64
OUTPUT_DIM = 1
NUM_LAYERS = 2
PACK_D = 8          # layer-0 input dim padded to a sublane-aligned width


def lstm_kernel(x_ref,      # (T*B, PACK_D) bf16, time-major, zero-padded cols
                w_ref,      # (PACK_D + 2H, 8H) bf16 weight slab
                s_ref,      # (8, 4H) f32 bias / fc slab
                out_ref):   # (B, OUTPUT_DIM) f32
    B = out_ref.shape[0]
    TB = x_ref.shape[0]
    T = TB // B
    H = w_ref.shape[1] // 8
    H4 = 4 * H

    # ---- static, 8-row-aligned slices of the packed slabs -------------------
    wih0 = w_ref[0:PACK_D, 0:H4]                      # (8, 4H)   bf16
    whh0_big = w_ref[PACK_D:PACK_D + H, :]            # (H, 8H)   bf16 [whh0|wih1]
    whh1 = w_ref[PACK_D + H:PACK_D + 2 * H, 0:H4]     # (H, 4H)   bf16

    b0 = s_ref[0:1, 0:H4]                             # (1, 4H)   f32
    b1 = s_ref[1:2, 0:H4]                             # (1, 4H)   f32
    fcw = s_ref[2:3, 0:H]                             # (1, H)    f32
    fcb = s_ref[3:4, 0:1]                             # (1, 1)    f32

    # ---- hoisted layer-0 input projection for ALL timesteps (one matmul) ----
    xproj0 = (jnp.dot(x_ref[...], wih0,
                      preferred_element_type=jnp.float32) + b0)   # (T*B, 4H)

    b1b = jnp.broadcast_to(b1, (B, H4))               # hoisted broadcast

    def gates_to_hc(s, c):
        # s = sigmoid(pre) over the full (B, 4H); packed gate order (i,f,o,g)
        # with the g pre-activation pre-scaled by 2, so 2*s-1 == tanh(raw g).
        i = s[:, 0:H]
        f = s[:, H:2 * H]
        o = s[:, 2 * H:3 * H]
        g = 2.0 * s[:, 3 * H:4 * H] - 1.0
        c_new = f * c + i * g
        h_new = o * jnp.tanh(c_new)
        return h_new, c_new

    zeros_h = jnp.zeros((B, H), jnp.float32)
    zeros_g = jnp.zeros((B, H4), jnp.float32)
    c0, c1 = zeros_h, zeros_h
    h1 = zeros_h
    rec0_next = zeros_g      # h0_{t-1} @ whh0 (left half of the big dot)
    rec1_next = zeros_g      # h1_{t-1} @ whh1 (independent of the h0 chain)

    # ---- fused 2-layer wavefront recurrence, fully unrolled (eval mode) -----
    for t in range(T):
        # layer 0, time t  (critical chain: one sigmoid+cell + one big dot)
        pre0 = xproj0[t * B:(t + 1) * B, :] + rec0_next
        s0 = jax.nn.sigmoid(pre0)
        h0, c0 = gates_to_hc(s0, c0)

        # single dependent MXU op per step: left 4H -> layer-0 recurrence for
        # t+1, right 4H -> layer-1 input projection for time t.
        big = jnp.dot(h0.astype(jnp.bfloat16), whh0_big,
                      preferred_element_type=jnp.float32)          # (B, 8H)
        rec0_next = big[:, 0:H4]
        xp1 = big[:, H4:2 * H4]

        # layer 1, time t  (rec1_next was produced last step -> off the chain)
        pre1 = rec1_next + xp1 + b1b
        s1 = jax.nn.sigmoid(pre1)
        h1, c1 = gates_to_hc(s1, c1)
        if t + 1 < T:
            rec1_next = jnp.dot(h1.astype(jnp.bfloat16), whh1,
                                preferred_element_type=jnp.float32)

    # ---- fc(h_n[-1]) as a VPU multiply + cross-lane reduce (O == 1) ---------
    out_ref[...] = jnp.sum(h1 * fcw, axis=-1, keepdims=True) + fcb


def _reorder_gates(w, axis=0, g_scale=1.0):
    """Repack PyTorch LSTM gate blocks (i, f, g, o) -> (i, f, o, g).

    g_scale=2.0 pre-scales the g block so tanh(x) == 2*sigmoid(2x) - 1 can be
    evaluated with the same full-width sigmoid used for i/f/o.
    """
    i, f, g, o = jnp.split(w, 4, axis=axis)
    return jnp.concatenate([i, f, o, g_scale * g], axis=axis)


def init_params(key, input_dim=INPUT_DIM, hidden_dim=HIDDEN_DIM,
                output_dim=OUTPUT_DIM):
    """Deterministic init, mimicking PyTorch's U(-1/sqrt(H), 1/sqrt(H))."""
    ks = jax.random.split(key, 11)
    bound = 1.0 / jnp.sqrt(jnp.float32(hidden_dim))

    def u(k, shape):
        return jax.random.uniform(k, shape, jnp.float32, -bound, bound)

    return {
        # layer 0
        "w_ih0": u(ks[0], (4 * hidden_dim, input_dim)),
        "w_hh0": u(ks[1], (4 * hidden_dim, hidden_dim)),
        "b_ih0": u(ks[2], (4 * hidden_dim,)),
        "b_hh0": u(ks[3], (4 * hidden_dim,)),
        # layer 1
        "w_ih1": u(ks[4], (4 * hidden_dim, hidden_dim)),
        "w_hh1": u(ks[5], (4 * hidden_dim, hidden_dim)),
        "b_ih1": u(ks[6], (4 * hidden_dim,)),
        "b_hh1": u(ks[7], (4 * hidden_dim,)),
        # fc
        "fc_w": u(ks[8], (output_dim, hidden_dim)),
        "fc_b": u(ks[9], (output_dim,)),
    }


def pack_params(params, input_dim=INPUT_DIM, hidden_dim=HIDDEN_DIM,
                output_dim=OUTPUT_DIM):
    """One-time weight packing (call ONCE; cache the result, not per forward).

    Returns:
      w_slab: (PACK_D + 2H, 8H) bf16  -- [wih0(pad) ; whh0|wih1 ; whh1(pad)]
      s_slab: (8, 4H) f32             -- rows: b0, b1, fc_w, fc_b
    Gate order repacked to (i,f,o,g); g columns of weights AND folded biases
    pre-scaled by 2 for the tanh->sigmoid rewrite.
    """
    H, D = hidden_dim, input_dim
    wih0_t = _reorder_gates(params["w_ih0"], 0, 2.0).T                # (D, 4H)
    whh0_t = _reorder_gates(params["w_hh0"], 0, 2.0).T                # (H, 4H)
    wih1_t = _reorder_gates(params["w_ih1"], 0, 2.0).T                # (H, 4H)
    whh1_t = _reorder_gates(params["w_hh1"], 0, 2.0).T                # (H, 4H)
    b0 = _reorder_gates(params["b_ih0"] + params["b_hh0"], 0, 2.0)    # (4H,)
    b1 = _reorder_gates(params["b_ih1"] + params["b_hh1"], 0, 2.0)    # (4H,)

    wih0_pad = jnp.zeros((PACK_D, 8 * H), jnp.float32).at[:D, :4 * H].set(wih0_t)
    whh0_big = jnp.concatenate([whh0_t, wih1_t], axis=1)              # (H, 8H)
    whh1_pad = jnp.zeros((H, 8 * H), jnp.float32).at[:, :4 * H].set(whh1_t)
    w_slab = jnp.concatenate([wih0_pad, whh0_big, whh1_pad],
                             axis=0).astype(jnp.bfloat16)             # (136, 8H)

    s_slab = jnp.zeros((8, 4 * H), jnp.float32)
    s_slab = s_slab.at[0, :].set(b0)
    s_slab = s_slab.at[1, :].set(b1)
    s_slab = s_slab.at[2, :H].set(params["fc_w"].reshape(output_dim, H)[0])
    s_slab = s_slab.at[3, 0].set(params["fc_b"].reshape(-1)[0])
    return {"w_slab": w_slab, "s_slab": s_slab}


@jax.jit
def lstm_model_forward(x, w_slab, s_slab):
    """x: (B, T, INPUT_DIM) f32 -> (B, OUTPUT_DIM) f32."""
    B, T, D = x.shape
    # Time-major, flattened, lane-padded (D -> PACK_D) and cast to bf16 so the
    # hoisted layer-0 projection is one aligned matmul in the kernel.
    x_tm = jnp.transpose(x, (1, 0, 2)).reshape(T * B, D)
    x_pad = jnp.pad(x_tm, ((0, 0), (0, PACK_D - D))).astype(jnp.bfloat16)

    vmem = pl.BlockSpec(memory_space=pltpu.MemorySpace.VMEM)
    # Grid-less: whole problem (<200 KiB) fits trivially in VMEM on every chip
    # generation; the recurrence is serial in T so there is nothing to tile.
    return pl.pallas_call(
        lstm_kernel,
        out_shape=jax.ShapeDtypeStruct((B, OUTPUT_DIM), jnp.float32),
        in_specs=[vmem, vmem, vmem],
        out_specs=vmem,
    )(x_pad, w_slab, s_slab)


def reference_forward(x, params):
    """Pure-JAX f32 reference (eval-mode PyTorch LSTM semantics)."""
    B, T, D = x.shape
    H = HIDDEN_DIM

    def run_layer(seq, w_ih, w_hh, b_ih, b_hh):
        h = jnp.zeros((B, H), jnp.float32)
        c = jnp.zeros((B, H), jnp.float32)
        outs = []
        for t in range(T):
            g = seq[:, t, :] @ w_ih.T + h @ w_hh.T + b_ih + b_hh
            i = jax.nn.sigmoid(g[:, 0:H])
            f = jax.nn.sigmoid(g[:, H:2 * H])
            gg = jnp.tanh(g[:, 2 * H:3 * H])
            o = jax.nn.sigmoid(g[:, 3 * H:4 * H])
            c = f * c + i * gg
            h = o * jnp.tanh(c)
            outs.append(h)
        return jnp.stack(outs, axis=1), h

    seq1, _ = run_layer(x, params["w_ih0"], params["w_hh0"],
                        params["b_ih0"], params["b_hh0"])
    _, h_last = run_layer(seq1, params["w_ih1"], params["w_hh1"],
                          params["b_ih1"], params["b_hh1"])
    return h_last @ params["fc_w"].T + params["fc_b"]


if __name__ == "__main__":
    key = jax.random.PRNGKey(0)
    k_x, k_p = jax.random.split(key)

    batch, seq = 2, 8
    x = jax.random.normal(k_x, (batch, seq, INPUT_DIM), jnp.float32)
    params = init_params(k_p)

    # Pack once, outside the per-call path (cached packed tensors).
    packed = pack_params(params)

    out = jax.block_until_ready(
        lstm_model_forward(x, packed["w_slab"], packed["s_slab"]))

    ref = reference_forward(x, params)
    assert out.shape == (batch, OUTPUT_DIM)
    # bf16 MXU operands -> looser tolerance than the pure-f32 variant.
    assert jnp.allclose(out, ref, atol=2e-2, rtol=2e-2), (out, ref)

    print("KERNEL_OK")
</pallas_src>

<mosaic_0001>
module attributes {stable_mosaic.version = 11 : i64} {
  func.func @lstm_kernel(%arg0: memref<16x8xbf16, #tpu.memory_space<vmem>>, %arg1: memref<136x512xbf16, #tpu.memory_space<vmem>>, %arg2: memref<8x256xf32, #tpu.memory_space<vmem>>, %arg3: memref<2x1xf32, #tpu.memory_space<vmem>>) attributes {dimension_semantics = [], scalar_prefetch = 0 : i64, scratch_operands = 0 : i64, tpu.core_type = #tpu.core_type<tc>} {
    %c0 = arith.constant 0 : index
    %c0_0 = arith.constant 0 : index
    %0 = vector.load %arg1[%c0, %c0_0] : memref<136x512xbf16, #tpu.memory_space<vmem>>, vector<8x256xbf16>
    %c8 = arith.constant 8 : index
    %c0_1 = arith.constant 0 : index
    %1 = vector.load %arg1[%c8, %c0_1] : memref<136x512xbf16, #tpu.memory_space<vmem>>, vector<64x512xbf16>
    %c72 = arith.constant 72 : index
    %c0_2 = arith.constant 0 : index
    %2 = vector.load %arg1[%c72, %c0_2] : memref<136x512xbf16, #tpu.memory_space<vmem>>, vector<64x256xbf16>
    %c0_3 = arith.constant 0 : index
    %c0_4 = arith.constant 0 : index
    %3 = vector.load %arg2[%c0_3, %c0_4] : memref<8x256xf32, #tpu.memory_space<vmem>>, vector<1x256xf32>
    %c1 = arith.constant 1 : index
    %c0_5 = arith.constant 0 : index
    %4 = vector.load %arg2[%c1, %c0_5] : memref<8x256xf32, #tpu.memory_space<vmem>>, vector<1x256xf32>
    %c2 = arith.constant 2 : index
    %c0_6 = arith.constant 0 : index
    %5 = vector.load %arg2[%c2, %c0_6] : memref<8x256xf32, #tpu.memory_space<vmem>>, vector<1x64xf32>
    %c3 = arith.constant 3 : index
    %c0_7 = arith.constant 0 : index
    %6 = vector.load %arg2[%c3, %c0_7] : memref<8x256xf32, #tpu.memory_space<vmem>>, vector<1x1xf32>
    %c0_8 = arith.constant 0 : index
    %c0_9 = arith.constant 0 : index
    %7 = vector.load %arg0[%c0_8, %c0_9] : memref<16x8xbf16, #tpu.memory_space<vmem>>, vector<16x8xbf16>
    %cst = arith.constant dense<0.000000e+00> : vector<16x256xf32>
    %8 = tpu.matmul %7, %0, %cst {dimension_numbers = #tpu.dot_dimension_numbers<[1], [0], [0], [1], [0, 0, 1, 1], [], []>} : vector<16x8xbf16>, vector<8x256xbf16>, vector<16x256xf32> -> vector<16x256xf32>
    %9 = vector.broadcast %3 : vector<1x256xf32> to vector<16x256xf32>
    %10 = arith.addf %8, %9 : vector<16x256xf32>
    %11 = vector.shape_cast %4 : vector<1x256xf32> to vector<1x256xf32>
    %12 = vector.broadcast %11 : vector<1x256xf32> to vector<2x256xf32>
    %cst_10 = arith.constant 0.000000e+00 : f32
    %13 = vector.broadcast %cst_10 : f32 to vector<2x64xf32>
    %cst_11 = arith.constant 0.000000e+00 : f32
    %14 = vector.broadcast %cst_11 : f32 to vector<2x256xf32>
    %15 = vector.extract_strided_slice %10 {offsets = [0, 0], sizes = [2, 256], strides = [1, 1]} : vector<16x256xf32> to vector<2x256xf32>
    %16 = arith.addf %15, %14 : vector<2x256xf32>
    %17 = arith.negf %16 : vector<2x256xf32>
    %18 = math.exp %17 : vector<2x256xf32>
    %cst_12 = arith.constant 1.000000e+00 : f32
    %19 = vector.broadcast %cst_12 : f32 to vector<2x256xf32>
    %20 = arith.addf %19, %18 : vector<2x256xf32>
    %21 = arith.divf %19, %20 : vector<2x256xf32>
    %22 = vector.extract_strided_slice %21 {offsets = [0, 0], sizes = [2, 64], strides = [1, 1]} : vector<2x256xf32> to vector<2x64xf32>
    %23 = vector.extract_strided_slice %21 {offsets = [0, 64], sizes = [2, 64], strides = [1, 1]} : vector<2x256xf32> to vector<2x64xf32>
    %24 = vector.extract_strided_slice %21 {offsets = [0, 128], sizes = [2, 64], strides = [1, 1]} : vector<2x256xf32> to vector<2x64xf32>
    %25 = vector.extract_strided_slice %21 {offsets = [0, 192], sizes = [2, 64], strides = [1, 1]} : vector<2x256xf32> to vector<2x64xf32>
    %cst_13 = arith.constant 2.000000e+00 : f32
    %26 = vector.broadcast %cst_13 : f32 to vector<2x64xf32>
    %27 = arith.mulf %26, %25 : vector<2x64xf32>
    %cst_14 = arith.constant 1.000000e+00 : f32
    %28 = vector.broadcast %cst_14 : f32 to vector<2x64xf32>
    %29 = arith.subf %27, %28 : vector<2x64xf32>
    %30 = arith.mulf %23, %13 : vector<2x64xf32>
    %31 = arith.mulf %22, %29 : vector<2x64xf32>
    %32 = arith.addf %30, %31 : vector<2x64xf32>
    %33 = math.tanh %32 : vector<2x64xf32>
    %34 = arith.mulf %24, %33 : vector<2x64xf32>
    %35 = arith.truncf %34 : vector<2x64xf32> to vector<2x64xbf16>
    %cst_15 = arith.constant dense<0.000000e+00> : vector<2x512xf32>
    %36 = tpu.matmul %35, %1, %cst_15 {dimension_numbers = #tpu.dot_dimension_numbers<[1], [0], [0], [1], [0, 0, 1, 1], [], []>} : vector<2x64xbf16>, vector<64x512xbf16>, vector<2x512xf32> -> vector<2x512xf32>
    %37 = vector.extract_strided_slice %36 {offsets = [0, 0], sizes = [2, 256], strides = [1, 1]} : vector<2x512xf32> to vector<2x256xf32>
    %38 = vector.extract_strided_slice %36 {offsets = [0, 256], sizes = [2, 256], strides = [1, 1]} : vector<2x512xf32> to vector<2x256xf32>
    %39 = arith.addf %14, %38 : vector<2x256xf32>
    %40 = arith.addf %39, %12 : vector<2x256xf32>
    %41 = arith.negf %40 : vector<2x256xf32>
    %42 = math.exp %41 : vector<2x256xf32>
    %cst_16 = arith.constant 1.000000e+00 : f32
    %43 = vector.broadcast %cst_16 : f32 to vector<2x256xf32>
    %44 = arith.addf %43, %42 : vector<2x256xf32>
    %45 = arith.divf %43, %44 : vector<2x256xf32>
    %46 = vector.extract_strided_slice %45 {offsets = [0, 0], sizes = [2, 64], strides = [1, 1]} : vector<2x256xf32> to vector<2x64xf32>
    %47 = vector.extract_strided_slice %45 {offsets = [0, 64], sizes = [2, 64], strides = [1, 1]} : vector<2x256xf32> to vector<2x64xf32>
    %48 = vector.extract_strided_slice %45 {offsets = [0, 128], sizes = [2, 64], strides = [1, 1]} : vector<2x256xf32> to vector<2x64xf32>
    %49 = vector.extract_strided_slice %45 {offsets = [0, 192], sizes = [2, 64], strides = [1, 1]} : vector<2x256xf32> to vector<2x64xf32>
    %cst_17 = arith.constant 2.000000e+00 : f32
    %50 = vector.broadcast %cst_17 : f32 to vector<2x64xf32>
    %51 = arith.mulf %50, %49 : vector<2x64xf32>
    %cst_18 = arith.constant 1.000000e+00 : f32
    %52 = vector.broadcast %cst_18 : f32 to vector<2x64xf32>
    %53 = arith.subf %51, %52 : vector<2x64xf32>
    %54 = arith.mulf %47, %13 : vector<2x64xf32>
    %55 = arith.mulf %46, %53 : vector<2x64xf32>
    %56 = arith.addf %54, %55 : vector<2x64xf32>
    %57 = math.tanh %56 : vector<2x64xf32>
    %58 = arith.mulf %48, %57 : vector<2x64xf32>
    %59 = arith.truncf %58 : vector<2x64xf32> to vector<2x64xbf16>
    %cst_19 = arith.constant dense<0.000000e+00> : vector<2x256xf32>
    %60 = tpu.matmul %59, %2, %cst_19 {dimension_numbers = #tpu.dot_dimension_numbers<[1], [0], [0], [1], [0, 0, 1, 1], [], []>} : vector<2x64xbf16>, vector<64x256xbf16>, vector<2x256xf32> -> vector<2x256xf32>
    %61 = vector.extract_strided_slice %10 {offsets = [2, 0], sizes = [2, 256], strides = [1, 1]} : vector<16x256xf32> to vector<2x256xf32>
    %62 = arith.addf %61, %37 : vector<2x256xf32>
    %63 = arith.negf %62 : vector<2x256xf32>
    %64 = math.exp %63 : vector<2x256xf32>
    %cst_20 = arith.constant 1.000000e+00 : f32
    %65 = vector.broadcast %cst_20 : f32 to vector<2x256xf32>
    %66 = arith.addf %65, %64 : vector<2x256xf32>
    %67 = arith.divf %65, %66 : vector<2x256xf32>
    %68 = vector.extract_strided_slice %67 {offsets = [0, 0], sizes = [2, 64], strides = [1, 1]} : vector<2x256xf32> to vector<2x64xf32>
    %69 = vector.extract_strided_slice %67 {offsets = [0, 64], sizes = [2, 64], strides = [1, 1]} : vector<2x256xf32> to vector<2x64xf32>
    %70 = vector.extract_strided_slice %67 {offsets = [0, 128], sizes = [2, 64], strides = [1, 1]} : vector<2x256xf32> to vector<2x64xf32>
    %71 = vector.extract_strided_slice %67 {offsets = [0, 192], sizes = [2, 64], strides = [1, 1]} : vector<2x256xf32> to vector<2x64xf32>
    %cst_21 = arith.constant 2.000000e+00 : f32
    %72 = vector.broadcast %cst_21 : f32 to vector<2x64xf32>
    %73 = arith.mulf %72, %71 : vector<2x64xf32>
    %cst_22 = arith.constant 1.000000e+00 : f32
    %74 = vector.broadcast %cst_22 : f32 to vector<2x64xf32>
    %75 = arith.subf %73, %74 : vector<2x64xf32>
    %76 = arith.mulf %69, %32 : vector<2x64xf32>
    %77 = arith.mulf %68, %75 : vector<2x64xf32>
    %78 = arith.addf %76, %77 : vector<2x64xf32>
    %79 = math.tanh %78 : vector<2x64xf32>
    %80 = arith.mulf %70, %79 : vector<2x64xf32>
    %81 = arith.truncf %80 : vector<2x64xf32> to vector<2x64xbf16>
    %cst_23 = arith.constant dense<0.000000e+00> : vector<2x512xf32>
    %82 = tpu.matmul %81, %1, %cst_23 {dimension_numbers = #tpu.dot_dimension_numbers<[1], [0], [0], [1], [0, 0, 1, 1], [], []>} : vector<2x64xbf16>, vector<64x512xbf16>, vector<2x512xf32> -> vector<2x512xf32>
    %83 = vector.extract_strided_slice %82 {offsets = [0, 0], sizes = [2, 256], strides = [1, 1]} : vector<2x512xf32> to vector<2x256xf32>
    %84 = vector.extract_strided_slice %82 {offsets = [0, 256], sizes = [2, 256], strides = [1, 1]} : vector<2x512xf32> to vector<2x256xf32>
    %85 = arith.addf %60, %84 : vector<2x256xf32>
    %86 = arith.addf %85, %12 : vector<2x256xf32>
    %87 = arith.negf %86 : vector<2x256xf32>
    %88 = math.exp %87 : vector<2x256xf32>
    %cst_24 = arith.constant 1.000000e+00 : f32
    %89 = vector.broadcast %cst_24 : f32 to vector<2x256xf32>
    %90 = arith.addf %89, %88 : vector<2x256xf32>
    %91 = arith.divf %89, %90 : vector<2x256xf32>
    %92 = vector.extract_strided_slice %91 {offsets = [0, 0], sizes = [2, 64], strides = [1, 1]} : vector<2x256xf32> to vector<2x64xf32>
    %93 = vector.extract_strided_slice %91 {offsets = [0, 64], sizes = [2, 64], strides = [1, 1]} : vector<2x256xf32> to vector<2x64xf32>
    %94 = vector.extract_strided_slice %91 {offsets = [0, 128], sizes = [2, 64], strides = [1, 1]} : vector<2x256xf32> to vector<2x64xf32>
    %95 = vector.extract_strided_slice %91 {offsets = [0, 192], sizes = [2, 64], strides = [1, 1]} : vector<2x256xf32> to vector<2x64xf32>
    %cst_25 = arith.constant 2.000000e+00 : f32
    %96 = vector.broadcast %cst_25 : f32 to vector<2x64xf32>
    %97 = arith.mulf %96, %95 : vector<2x64xf32>
    %cst_26 = arith.constant 1.000000e+00 : f32
    %98 = vector.broadcast %cst_26 : f32 to vector<2x64xf32>
    %99 = arith.subf %97, %98 : vector<2x64xf32>
    %100 = arith.mulf %93, %56 : vector<2x64xf32>
    %101 = arith.mulf %92, %99 : vector<2x64xf32>
    %102 = arith.addf %100, %101 : vector<2x64xf32>
    %103 = math.tanh %102 : vector<2x64xf32>
    %104 = arith.mulf %94, %103 : vector<2x64xf32>
    %105 = arith.truncf %104 : vector<2x64xf32> to vector<2x64xbf16>
    %cst_27 = arith.constant dense<0.000000e+00> : vector<2x256xf32>
    %106 = tpu.matmul %105, %2, %cst_27 {dimension_numbers = #tpu.dot_dimension_numbers<[1], [0], [0], [1], [0, 0, 1, 1], [], []>} : vector<2x64xbf16>, vector<64x256xbf16>, vector<2x256xf32> -> vector<2x256xf32>
    %107 = vector.extract_strided_slice %10 {offsets = [4, 0], sizes = [2, 256], strides = [1, 1]} : vector<16x256xf32> to vector<2x256xf32>
    %108 = arith.addf %107, %83 : vector<2x256xf32>
    %109 = arith.negf %108 : vector<2x256xf32>
    %110 = math.exp %109 : vector<2x256xf32>
    %cst_28 = arith.constant 1.000000e+00 : f32
    %111 = vector.broadcast %cst_28 : f32 to vector<2x256xf32>
    %112 = arith.addf %111, %110 : vector<2x256xf32>
    %113 = arith.divf %111, %112 : vector<2x256xf32>
    %114 = vector.extract_strided_slice %113 {offsets = [0, 0], sizes = [2, 64], strides = [1, 1]} : vector<2x256xf32> to vector<2x64xf32>
    %115 = vector.extract_strided_slice %113 {offsets = [0, 64], sizes = [2, 64], strides = [1, 1]} : vector<2x256xf32> to vector<2x64xf32>
    %116 = vector.extract_strided_slice %113 {offsets = [0, 128], sizes = [2, 64], strides = [1, 1]} : vector<2x256xf32> to vector<2x64xf32>
    %117 = vector.extract_strided_slice %113 {offsets = [0, 192], sizes = [2, 64], strides = [1, 1]} : vector<2x256xf32> to vector<2x64xf32>
    %cst_29 = arith.constant 2.000000e+00 : f32
    %118 = vector.broadcast %cst_29 : f32 to vector<2x64xf32>
    %119 = arith.mulf %118, %117 : vector<2x64xf32>
    %cst_30 = arith.constant 1.000000e+00 : f32
    %120 = vector.broadcast %cst_30 : f32 to vector<2x64xf32>
    %121 = arith.subf %119, %120 : vector<2x64xf32>
    %122 = arith.mulf %115, %78 : vector<2x64xf32>
    %123 = arith.mulf %114, %121 : vector<2x64xf32>
    %124 = arith.addf %122, %123 : vector<2x64xf32>
    %125 = math.tanh %124 : vector<2x64xf32>
    %126 = arith.mulf %116, %125 : vector<2x64xf32>
    %127 = arith.truncf %126 : vector<2x64xf32> to vector<2x64xbf16>
    %cst_31 = arith.constant dense<0.000000e+00> : vector<2x512xf32>
    %128 = tpu.matmul %127, %1, %cst_31 {dimension_numbers = #tpu.dot_dimension_numbers<[1], [0], [0], [1], [0, 0, 1, 1], [], []>} : vector<2x64xbf16>, vector<64x512xbf16>, vector<2x512xf32> -> vector<2x512xf32>
    %129 = vector.extract_strided_slice %128 {offsets = [0, 0], sizes = [2, 256], strides = [1, 1]} : vector<2x512xf32> to vector<2x256xf32>
    %130 = vector.extract_strided_slice %128 {offsets = [0, 256], sizes = [2, 256], strides = [1, 1]} : vector<2x512xf32> to vector<2x256xf32>
    %131 = arith.addf %106, %130 : vector<2x256xf32>
    %132 = arith.addf %131, %12 : vector<2x256xf32>
    %133 = arith.negf %132 : vector<2x256xf32>
    %134 = math.exp %133 : vector<2x256xf32>
    %cst_32 = arith.constant 1.000000e+00 : f32
    %135 = vector.broadcast %cst_32 : f32 to vector<2x256xf32>
    %136 = arith.addf %135, %134 : vector<2x256xf32>
    %137 = arith.divf %135, %136 : vector<2x256xf32>
    %138 = vector.extract_strided_slice %137 {offsets = [0, 0], sizes = [2, 64], strides = [1, 1]} : vector<2x256xf32> to vector<2x64xf32>
    %139 = vector.extract_strided_slice %137 {offsets = [0, 64], sizes = [2, 64], strides = [1, 1]} : vector<2x256xf32> to vector<2x64xf32>
    %140 = vector.extract_strided_slice %137 {offsets = [0, 128], sizes = [2, 64], strides = [1, 1]} : vector<2x256xf32> to vector<2x64xf32>
    %141 = vector.extract_strided_slice %137 {offsets = [0, 192], sizes = [2, 64], strides = [1, 1]} : vector<2x256xf32> to vector<2x64xf32>
    %cst_33 = arith.constant 2.000000e+00 : f32
    %142 = vector.broadcast %cst_33 : f32 to vector<2x64xf32>
    %143 = arith.mulf %142, %141 : vector<2x64xf32>
    %cst_34 = arith.constant 1.000000e+00 : f32
    %144 = vector.broadcast %cst_34 : f32 to vector<2x64xf32>
    %145 = arith.subf %143, %144 : vector<2x64xf32>
    %146 = arith.mulf %139, %102 : vector<2x64xf32>
    %147 = arith.mulf %138, %145 : vector<2x64xf32>
    %148 = arith.addf %146, %147 : vector<2x64xf32>
    %149 = math.tanh %148 : vector<2x64xf32>
    %150 = arith.mulf %140, %149 : vector<2x64xf32>
    %151 = arith.truncf %150 : vector<2x64xf32> to vector<2x64xbf16>
    %cst_35 = arith.constant dense<0.000000e+00> : vector<2x256xf32>
    %152 = tpu.matmul %151, %2, %cst_35 {dimension_numbers = #tpu.dot_dimension_numbers<[1], [0], [0], [1], [0, 0, 1, 1], [], []>} : vector<2x64xbf16>, vector<64x256xbf16>, vector<2x256xf32> -> vector<2x256xf32>
    %153 = vector.extract_strided_slice %10 {offsets = [6, 0], sizes = [2, 256], strides = [1, 1]} : vector<16x256xf32> to vector<2x256xf32>
    %154 = arith.addf %153, %129 : vector<2x256xf32>
    %155 = arith.negf %154 : vector<2x256xf32>
    %156 = math.exp %155 : vector<2x256xf32>
    %cst_36 = arith.constant 1.000000e+00 : f32
    %157 = vector.broadcast %cst_36 : f32 to vector<2x256xf32>
    %158 = arith.addf %157, %156 : vector<2x256xf32>
    %159 = arith.divf %157, %158 : vector<2x256xf32>
    %160 = vector.extract_strided_slice %159 {offsets = [0, 0], sizes = [2, 64], strides = [1, 1]} : vector<2x256xf32> to vector<2x64xf32>
    %161 = vector.extract_strided_slice %159 {offsets = [0, 64], sizes = [2, 64], strides = [1, 1]} : vector<2x256xf32> to vector<2x64xf32>
    %162 = vector.extract_strided_slice %159 {offsets = [0, 128], sizes = [2, 64], strides = [1, 1]} : vector<2x256xf32> to vector<2x64xf32>
    %163 = vector.extract_strided_slice %159 {offsets = [0, 192], sizes = [2, 64], strides = [1, 1]} : vector<2x256xf32> to vector<2x64xf32>
    %cst_37 = arith.constant 2.000000e+00 : f32
    %164 = vector.broadcast %cst_37 : f32 to vector<2x64xf32>
    %165 = arith.mulf %164, %163 : vector<2x64xf32>
    %cst_38 = arith.constant 1.000000e+00 : f32
    %166 = vector.broadcast %cst_38 : f32 to vector<2x64xf32>
    %167 = arith.subf %165, %166 : vector<2x64xf32>
    %168 = arith.mulf %161, %124 : vector<2x64xf32>
    %169 = arith.mulf %160, %167 : vector<2x64xf32>
    %170 = arith.addf %168, %169 : vector<2x64xf32>
    %171 = math.tanh %170 : vector<2x64xf32>
    %172 = arith.mulf %162, %171 : vector<2x64xf32>
    %173 = arith.truncf %172 : vector<2x64xf32> to vector<2x64xbf16>
    %cst_39 = arith.constant dense<0.000000e+00> : vector<2x512xf32>
    %174 = tpu.matmul %173, %1, %cst_39 {dimension_numbers = #tpu.dot_dimension_numbers<[1], [0], [0], [1], [0, 0, 1, 1], [], []>} : vector<2x64xbf16>, vector<64x512xbf16>, vector<2x512xf32> -> vector<2x512xf32>
    %175 = vector.extract_strided_slice %174 {offsets = [0, 0], sizes = [2, 256], strides = [1, 1]} : vector<2x512xf32> to vector<2x256xf32>
    %176 = vector.extract_strided_slice %174 {offsets = [0, 256], sizes = [2, 256], strides = [1, 1]} : vector<2x512xf32> to vector<2x256xf32>
    %177 = arith.addf %152, %176 : vector<2x256xf32>
    %178 = arith.addf %177, %12 : vector<2x256xf32>
    %179 = arith.negf %178 : vector<2x256xf32>
    %180 = math.exp %179 : vector<2x256xf32>
    %cst_40 = arith.constant 1.000000e+00 : f32
    %181 = vector.broadcast %cst_40 : f32 to vector<2x256xf32>
    %182 = arith.addf %181, %180 : vector<2x256xf32>
    %183 = arith.divf %181, %182 : vector<2x256xf32>
    %184 = vector.extract_strided_slice %183 {offsets = [0, 0], sizes = [2, 64], strides = [1, 1]} : vector<2x256xf32> to vector<2x64xf32>
    %185 = vector.extract_strided_slice %183 {offsets = [0, 64], sizes = [2, 64], strides = [1, 1]} : vector<2x256xf32> to vector<2x64xf32>
    %186 = vector.extract_strided_slice %183 {offsets = [0, 128], sizes = [2, 64], strides = [1, 1]} : vector<2x256xf32> to vector<2x64xf32>
    %187 = vector.extract_strided_slice %183 {offsets = [0, 192], sizes = [2, 64], strides = [1, 1]} : vector<2x256xf32> to vector<2x64xf32>
    %cst_41 = arith.constant 2.000000e+00 : f32
    %188 = vector.broadcast %cst_41 : f32 to vector<2x64xf32>
    %189 = arith.mulf %188, %187 : vector<2x64xf32>
    %cst_42 = arith.constant 1.000000e+00 : f32
    %190 = vector.broadcast %cst_42 : f32 to vector<2x64xf32>
    %191 = arith.subf %189, %190 : vector<2x64xf32>
    %192 = arith.mulf %185, %148 : vector<2x64xf32>
    %193 = arith.mulf %184, %191 : vector<2x64xf32>
    %194 = arith.addf %192, %193 : vector<2x64xf32>
    %195 = math.tanh %194 : vector<2x64xf32>
    %196 = arith.mulf %186, %195 : vector<2x64xf32>
    %197 = arith.truncf %196 : vector<2x64xf32> to vector<2x64xbf16>
    %cst_43 = arith.constant dense<0.000000e+00> : vector<2x256xf32>
    %198 = tpu.matmul %197, %2, %cst_43 {dimension_numbers = #tpu.dot_dimension_numbers<[1], [0], [0], [1], [0, 0, 1, 1], [], []>} : vector<2x64xbf16>, vector<64x256xbf16>, vector<2x256xf32> -> vector<2x256xf32>
    %199 = vector.extract_strided_slice %10 {offsets = [8, 0], sizes = [2, 256], strides = [1, 1]} : vector<16x256xf32> to vector<2x256xf32>
    %200 = arith.addf %199, %175 : vector<2x256xf32>
    %201 = arith.negf %200 : vector<2x256xf32>
    %202 = math.exp %201 : vector<2x256xf32>
    %cst_44 = arith.constant 1.000000e+00 : f32
    %203 = vector.broadcast %cst_44 : f32 to vector<2x256xf32>
    %204 = arith.addf %203, %202 : vector<2x256xf32>
    %205 = arith.divf %203, %204 : vector<2x256xf32>
    %206 = vector.extract_strided_slice %205 {offsets = [0, 0], sizes = [2, 64], strides = [1, 1]} : vector<2x256xf32> to vector<2x64xf32>
    %207 = vector.extract_strided_slice %205 {offsets = [0, 64], sizes = [2, 64], strides = [1, 1]} : vector<2x256xf32> to vector<2x64xf32>
    %208 = vector.extract_strided_slice %205 {offsets = [0, 128], sizes = [2, 64], strides = [1, 1]} : vector<2x256xf32> to vector<2x64xf32>
    %209 = vector.extract_strided_slice %205 {offsets = [0, 192], sizes = [2, 64], strides = [1, 1]} : vector<2x256xf32> to vector<2x64xf32>
    %cst_45 = arith.constant 2.000000e+00 : f32
    %210 = vector.broadcast %cst_45 : f32 to vector<2x64xf32>
    %211 = arith.mulf %210, %209 : vector<2x64xf32>
    %cst_46 = arith.constant 1.000000e+00 : f32
    %212 = vector.broadcast %cst_46 : f32 to vector<2x64xf32>
    %213 = arith.subf %211, %212 : vector<2x64xf32>
    %214 = arith.mulf %207, %170 : vector<2x64xf32>
    %215 = arith.mulf %206, %213 : vector<2x64xf32>
    %216 = arith.addf %214, %215 : vector<2x64xf32>
    %217 = math.tanh %216 : vector<2x64xf32>
    %218 = arith.mulf %208, %217 : vector<2x64xf32>
    %219 = arith.truncf %218 : vector<2x64xf32> to vector<2x64xbf16>
    %cst_47 = arith.constant dense<0.000000e+00> : vector<2x512xf32>
    %220 = tpu.matmul %219, %1, %cst_47 {dimension_numbers = #tpu.dot_dimension_numbers<[1], [0], [0], [1], [0, 0, 1, 1], [], []>} : vector<2x64xbf16>, vector<64x512xbf16>, vector<2x512xf32> -> vector<2x512xf32>
    %221 = vector.extract_strided_slice %220 {offsets = [0, 0], sizes = [2, 256], strides = [1, 1]} : vector<2x512xf32> to vector<2x256xf32>
    %222 = vector.extract_strided_slice %220 {offsets = [0, 256], sizes = [2, 256], strides = [1, 1]} : vector<2x512xf32> to vector<2x256xf32>
    %223 = arith.addf %198, %222 : vector<2x256xf32>
    %224 = arith.addf %223, %12 : vector<2x256xf32>
    %225 = arith.negf %224 : vector<2x256xf32>
    %226 = math.exp %225 : vector<2x256xf32>
    %cst_48 = arith.constant 1.000000e+00 : f32
    %227 = vector.broadcast %cst_48 : f32 to vector<2x256xf32>
    %228 = arith.addf %227, %226 : vector<2x256xf32>
    %229 = arith.divf %227, %228 : vector<2x256xf32>
    %230 = vector.extract_strided_slice %229 {offsets = [0, 0], sizes = [2, 64], strides = [1, 1]} : vector<2x256xf32> to vector<2x64xf32>
    %231 = vector.extract_strided_slice %229 {offsets = [0, 64], sizes = [2, 64], strides = [1, 1]} : vector<2x256xf32> to vector<2x64xf32>
    %232 = vector.extract_strided_slice %229 {offsets = [0, 128], sizes = [2, 64], strides = [1, 1]} : vector<2x256xf32> to vector<2x64xf32>
    %233 = vector.extract_strided_slice %229 {offsets = [0, 192], sizes = [2, 64], strides = [1, 1]} : vector<2x256xf32> to vector<2x64xf32>
    %cst_49 = arith.constant 2.000000e+00 : f32
    %234 = vector.broadcast %cst_49 : f32 to vector<2x64xf32>
    %235 = arith.mulf %234, %233 : vector<2x64xf32>
    %cst_50 = arith.constant 1.000000e+00 : f32
    %236 = vector.broadcast %cst_50 : f32 to vector<2x64xf32>
    %237 = arith.subf %235, %236 : vector<2x64xf32>
    %238 = arith.mulf %231, %194 : vector<2x64xf32>
    %239 = arith.mulf %230, %237 : vector<2x64xf32>
    %240 = arith.addf %238, %239 : vector<2x64xf32>
    %241 = math.tanh %240 : vector<2x64xf32>
    %242 = arith.mulf %232, %241 : vector<2x64xf32>
    %243 = arith.truncf %242 : vector<2x64xf32> to vector<2x64xbf16>
    %cst_51 = arith.constant dense<0.000000e+00> : vector<2x256xf32>
    %244 = tpu.matmul %243, %2, %cst_51 {dimension_numbers = #tpu.dot_dimension_numbers<[1], [0], [0], [1], [0, 0, 1, 1], [], []>} : vector<2x64xbf16>, vector<64x256xbf16>, vector<2x256xf32> -> vector<2x256xf32>
    %245 = vector.extract_strided_slice %10 {offsets = [10, 0], sizes = [2, 256], strides = [1, 1]} : vector<16x256xf32> to vector<2x256xf32>
    %246 = arith.addf %245, %221 : vector<2x256xf32>
    %247 = arith.negf %246 : vector<2x256xf32>
    %248 = math.exp %247 : vector<2x256xf32>
    %cst_52 = arith.constant 1.000000e+00 : f32
    %249 = vector.broadcast %cst_52 : f32 to vector<2x256xf32>
    %250 = arith.addf %249, %248 : vector<2x256xf32>
    %251 = arith.divf %249, %250 : vector<2x256xf32>
    %252 = vector.extract_strided_slice %251 {offsets = [0, 0], sizes = [2, 64], strides = [1, 1]} : vector<2x256xf32> to vector<2x64xf32>
    %253 = vector.extract_strided_slice %251 {offsets = [0, 64], sizes = [2, 64], strides = [1, 1]} : vector<2x256xf32> to vector<2x64xf32>
    %254 = vector.extract_strided_slice %251 {offsets = [0, 128], sizes = [2, 64], strides = [1, 1]} : vector<2x256xf32> to vector<2x64xf32>
    %255 = vector.extract_strided_slice %251 {offsets = [0, 192], sizes = [2, 64], strides = [1, 1]} : vector<2x256xf32> to vector<2x64xf32>
    %cst_53 = arith.constant 2.000000e+00 : f32
    %256 = vector.broadcast %cst_53 : f32 to vector<2x64xf32>
    %257 = arith.mulf %256, %255 : vector<2x64xf32>
    %cst_54 = arith.constant 1.000000e+00 : f32
    %258 = vector.broadcast %cst_54 : f32 to vector<2x64xf32>
    %259 = arith.subf %257, %258 : vector<2x64xf32>
    %260 = arith.mulf %253, %216 : vector<2x64xf32>
    %261 = arith.mulf %252, %259 : vector<2x64xf32>
    %262 = arith.addf %260, %261 : vector<2x64xf32>
    %263 = math.tanh %262 : vector<2x64xf32>
    %264 = arith.mulf %254, %263 : vector<2x64xf32>
    %265 = arith.truncf %264 : vector<2x64xf32> to vector<2x64xbf16>
    %cst_55 = arith.constant dense<0.000000e+00> : vector<2x512xf32>
    %266 = tpu.matmul %265, %1, %cst_55 {dimension_numbers = #tpu.dot_dimension_numbers<[1], [0], [0], [1], [0, 0, 1, 1], [], []>} : vector<2x64xbf16>, vector<64x512xbf16>, vector<2x512xf32> -> vector<2x512xf32>
    %267 = vector.extract_strided_slice %266 {offsets = [0, 0], sizes = [2, 256], strides = [1, 1]} : vector<2x512xf32> to vector<2x256xf32>
    %268 = vector.extract_strided_slice %266 {offsets = [0, 256], sizes = [2, 256], strides = [1, 1]} : vector<2x512xf32> to vector<2x256xf32>
    %269 = arith.addf %244, %268 : vector<2x256xf32>
    %270 = arith.addf %269, %12 : vector<2x256xf32>
    %271 = arith.negf %270 : vector<2x256xf32>
    %272 = math.exp %271 : vector<2x256xf32>
    %cst_56 = arith.constant 1.000000e+00 : f32
    %273 = vector.broadcast %cst_56 : f32 to vector<2x256xf32>
    %274 = arith.addf %273, %272 : vector<2x256xf32>
    %275 = arith.divf %273, %274 : vector<2x256xf32>
    %276 = vector.extract_strided_slice %275 {offsets = [0, 0], sizes = [2, 64], strides = [1, 1]} : vector<2x256xf32> to vector<2x64xf32>
    %277 = vector.extract_strided_slice %275 {offsets = [0, 64], sizes = [2, 64], strides = [1, 1]} : vector<2x256xf32> to vector<2x64xf32>
    %278 = vector.extract_strided_slice %275 {offsets = [0, 128], sizes = [2, 64], strides = [1, 1]} : vector<2x256xf32> to vector<2x64xf32>
    %279 = vector.extract_strided_slice %275 {offsets = [0, 192], sizes = [2, 64], strides = [1, 1]} : vector<2x256xf32> to vector<2x64xf32>
    %cst_57 = arith.constant 2.000000e+00 : f32
    %280 = vector.broadcast %cst_57 : f32 to vector<2x64xf32>
    %281 = arith.mulf %280, %279 : vector<2x64xf32>
    %cst_58 = arith.constant 1.000000e+00 : f32
    %282 = vector.broadcast %cst_58 : f32 to vector<2x64xf32>
    %283 = arith.subf %281, %282 : vector<2x64xf32>
    %284 = arith.mulf %277, %240 : vector<2x64xf32>
    %285 = arith.mulf %276, %283 : vector<2x64xf32>
    %286 = arith.addf %284, %285 : vector<2x64xf32>
    %287 = math.tanh %286 : vector<2x64xf32>
    %288 = arith.mulf %278, %287 : vector<2x64xf32>
    %289 = arith.truncf %288 : vector<2x64xf32> to vector<2x64xbf16>
    %cst_59 = arith.constant dense<0.000000e+00> : vector<2x256xf32>
    %290 = tpu.matmul %289, %2, %cst_59 {dimension_numbers = #tpu.dot_dimension_numbers<[1], [0], [0], [1], [0, 0, 1, 1], [], []>} : vector<2x64xbf16>, vector<64x256xbf16>, vector<2x256xf32> -> vector<2x256xf32>
    %291 = vector.extract_strided_slice %10 {offsets = [12, 0], sizes = [2, 256], strides = [1, 1]} : vector<16x256xf32> to vector<2x256xf32>
    %292 = arith.addf %291, %267 : vector<2x256xf32>
    %293 = arith.negf %292 : vector<2x256xf32>
    %294 = math.exp %293 : vector<2x256xf32>
    %cst_60 = arith.constant 1.000000e+00 : f32
    %295 = vector.broadcast %cst_60 : f32 to vector<2x256xf32>
    %296 = arith.addf %295, %294 : vector<2x256xf32>
    %297 = arith.divf %295, %296 : vector<2x256xf32>
    %298 = vector.extract_strided_slice %297 {offsets = [0, 0], sizes = [2, 64], strides = [1, 1]} : vector<2x256xf32> to vector<2x64xf32>
    %299 = vector.extract_strided_slice %297 {offsets = [0, 64], sizes = [2, 64], strides = [1, 1]} : vector<2x256xf32> to vector<2x64xf32>
    %300 = vector.extract_strided_slice %297 {offsets = [0, 128], sizes = [2, 64], strides = [1, 1]} : vector<2x256xf32> to vector<2x64xf32>
    %301 = vector.extract_strided_slice %297 {offsets = [0, 192], sizes = [2, 64], strides = [1, 1]} : vector<2x256xf32> to vector<2x64xf32>
    %cst_61 = arith.constant 2.000000e+00 : f32
    %302 = vector.broadcast %cst_61 : f32 to vector<2x64xf32>
    %303 = arith.mulf %302, %301 : vector<2x64xf32>
    %cst_62 = arith.constant 1.000000e+00 : f32
    %304 = vector.broadcast %cst_62 : f32 to vector<2x64xf32>
    %305 = arith.subf %303, %304 : vector<2x64xf32>
    %306 = arith.mulf %299, %262 : vector<2x64xf32>
    %307 = arith.mulf %298, %305 : vector<2x64xf32>
    %308 = arith.addf %306, %307 : vector<2x64xf32>
    %309 = math.tanh %308 : vector<2x64xf32>
    %310 = arith.mulf %300, %309 : vector<2x64xf32>
    %311 = arith.truncf %310 : vector<2x64xf32> to vector<2x64xbf16>
    %cst_63 = arith.constant dense<0.000000e+00> : vector<2x512xf32>
    %312 = tpu.matmul %311, %1, %cst_63 {dimension_numbers = #tpu.dot_dimension_numbers<[1], [0], [0], [1], [0, 0, 1, 1], [], []>} : vector<2x64xbf16>, vector<64x512xbf16>, vector<2x512xf32> -> vector<2x512xf32>
    %313 = vector.extract_strided_slice %312 {offsets = [0, 0], sizes = [2, 256], strides = [1, 1]} : vector<2x512xf32> to vector<2x256xf32>
    %314 = vector.extract_strided_slice %312 {offsets = [0, 256], sizes = [2, 256], strides = [1, 1]} : vector<2x512xf32> to vector<2x256xf32>
    %315 = arith.addf %290, %314 : vector<2x256xf32>
    %316 = arith.addf %315, %12 : vector<2x256xf32>
    %317 = arith.negf %316 : vector<2x256xf32>
    %318 = math.exp %317 : vector<2x256xf32>
    %cst_64 = arith.constant 1.000000e+00 : f32
    %319 = vector.broadcast %cst_64 : f32 to vector<2x256xf32>
    %320 = arith.addf %319, %318 : vector<2x256xf32>
    %321 = arith.divf %319, %320 : vector<2x256xf32>
    %322 = vector.extract_strided_slice %321 {offsets = [0, 0], sizes = [2, 64], strides = [1, 1]} : vector<2x256xf32> to vector<2x64xf32>
    %323 = vector.extract_strided_slice %321 {offsets = [0, 64], sizes = [2, 64], strides = [1, 1]} : vector<2x256xf32> to vector<2x64xf32>
    %324 = vector.extract_strided_slice %321 {offsets = [0, 128], sizes = [2, 64], strides = [1, 1]} : vector<2x256xf32> to vector<2x64xf32>
    %325 = vector.extract_strided_slice %321 {offsets = [0, 192], sizes = [2, 64], strides = [1, 1]} : vector<2x256xf32> to vector<2x64xf32>
    %cst_65 = arith.constant 2.000000e+00 : f32
    %326 = vector.broadcast %cst_65 : f32 to vector<2x64xf32>
    %327 = arith.mulf %326, %325 : vector<2x64xf32>
    %cst_66 = arith.constant 1.000000e+00 : f32
    %328 = vector.broadcast %cst_66 : f32 to vector<2x64xf32>
    %329 = arith.subf %327, %328 : vector<2x64xf32>
    %330 = arith.mulf %323, %286 : vector<2x64xf32>
    %331 = arith.mulf %322, %329 : vector<2x64xf32>
    %332 = arith.addf %330, %331 : vector<2x64xf32>
    %333 = math.tanh %332 : vector<2x64xf32>
    %334 = arith.mulf %324, %333 : vector<2x64xf32>
    %335 = arith.truncf %334 : vector<2x64xf32> to vector<2x64xbf16>
    %cst_67 = arith.constant dense<0.000000e+00> : vector<2x256xf32>
    %336 = tpu.matmul %335, %2, %cst_67 {dimension_numbers = #tpu.dot_dimension_numbers<[1], [0], [0], [1], [0, 0, 1, 1], [], []>} : vector<2x64xbf16>, vector<64x256xbf16>, vector<2x256xf32> -> vector<2x256xf32>
    %337 = vector.extract_strided_slice %10 {offsets = [14, 0], sizes = [2, 256], strides = [1, 1]} : vector<16x256xf32> to vector<2x256xf32>
    %338 = arith.addf %337, %313 : vector<2x256xf32>
    %339 = arith.negf %338 : vector<2x256xf32>
    %340 = math.exp %339 : vector<2x256xf32>
    %cst_68 = arith.constant 1.000000e+00 : f32
    %341 = vector.broadcast %cst_68 : f32 to vector<2x256xf32>
    %342 = arith.addf %341, %340 : vector<2x256xf32>
    %343 = arith.divf %341, %342 : vector<2x256xf32>
    %344 = vector.extract_strided_slice %343 {offsets = [0, 0], sizes = [2, 64], strides = [1, 1]} : vector<2x256xf32> to vector<2x64xf32>
    %345 = vector.extract_strided_slice %343 {offsets = [0, 64], sizes = [2, 64], strides = [1, 1]} : vector<2x256xf32> to vector<2x64xf32>
    %346 = vector.extract_strided_slice %343 {offsets = [0, 128], sizes = [2, 64], strides = [1, 1]} : vector<2x256xf32> to vector<2x64xf32>
    %347 = vector.extract_strided_slice %343 {offsets = [0, 192], sizes = [2, 64], strides = [1, 1]} : vector<2x256xf32> to vector<2x64xf32>
    %cst_69 = arith.constant 2.000000e+00 : f32
    %348 = vector.broadcast %cst_69 : f32 to vector<2x64xf32>
    %349 = arith.mulf %348, %347 : vector<2x64xf32>
    %cst_70 = arith.constant 1.000000e+00 : f32
    %350 = vector.broadcast %cst_70 : f32 to vector<2x64xf32>
    %351 = arith.subf %349, %350 : vector<2x64xf32>
    %352 = arith.mulf %345, %308 : vector<2x64xf32>
    %353 = arith.mulf %344, %351 : vector<2x64xf32>
    %354 = arith.addf %352, %353 : vector<2x64xf32>
    %355 = math.tanh %354 : vector<2x64xf32>
    %356 = arith.mulf %346, %355 : vector<2x64xf32>
    %357 = arith.truncf %356 : vector<2x64xf32> to vector<2x64xbf16>
    %cst_71 = arith.constant dense<0.000000e+00> : vector<2x512xf32>
    %358 = tpu.matmul %357, %1, %cst_71 {dimension_numbers = #tpu.dot_dimension_numbers<[1], [0], [0], [1], [0, 0, 1, 1], [], []>} : vector<2x64xbf16>, vector<64x512xbf16>, vector<2x512xf32> -> vector<2x512xf32>
    %359 = vector.extract_strided_slice %358 {offsets = [0, 256], sizes = [2, 256], strides = [1, 1]} : vector<2x512xf32> to vector<2x256xf32>
    %360 = arith.addf %336, %359 : vector<2x256xf32>
    %361 = arith.addf %360, %12 : vector<2x256xf32>
    %362 = arith.negf %361 : vector<2x256xf32>
    %363 = math.exp %362 : vector<2x256xf32>
    %cst_72 = arith.constant 1.000000e+00 : f32
    %364 = vector.broadcast %cst_72 : f32 to vector<2x256xf32>
    %365 = arith.addf %364, %363 : vector<2x256xf32>
    %366 = arith.divf %364, %365 : vector<2x256xf32>
    %367 = vector.extract_strided_slice %366 {offsets = [0, 0], sizes = [2, 64], strides = [1, 1]} : vector<2x256xf32> to vector<2x64xf32>
    %368 = vector.extract_strided_slice %366 {offsets = [0, 64], sizes = [2, 64], strides = [1, 1]} : vector<2x256xf32> to vector<2x64xf32>
    %369 = vector.extract_strided_slice %366 {offsets = [0, 128], sizes = [2, 64], strides = [1, 1]} : vector<2x256xf32> to vector<2x64xf32>
    %370 = vector.extract_strided_slice %366 {offsets = [0, 192], sizes = [2, 64], strides = [1, 1]} : vector<2x256xf32> to vector<2x64xf32>
    %cst_73 = arith.constant 2.000000e+00 : f32
    %371 = vector.broadcast %cst_73 : f32 to vector<2x64xf32>
    %372 = arith.mulf %371, %370 : vector<2x64xf32>
    %cst_74 = arith.constant 1.000000e+00 : f32
    %373 = vector.broadcast %cst_74 : f32 to vector<2x64xf32>
    %374 = arith.subf %372, %373 : vector<2x64xf32>
    %375 = arith.mulf %368, %332 : vector<2x64xf32>
    %376 = arith.mulf %367, %374 : vector<2x64xf32>
    %377 = arith.addf %375, %376 : vector<2x64xf32>
    %378 = math.tanh %377 : vector<2x64xf32>
    %379 = arith.mulf %369, %378 : vector<2x64xf32>
    %380 = vector.broadcast %5 : vector<1x64xf32> to vector<2x64xf32>
    %381 = arith.mulf %379, %380 : vector<2x64xf32>
    %cst_75 = arith.constant dense<0.000000e+00> : vector<2xf32>
    %382 = vector.multi_reduction <add>, %381, %cst_75 [1] : vector<2x64xf32> to vector<2xf32>
    %383 = vector.shape_cast %382 : vector<2xf32> to vector<2x1xf32>
    %384 = vector.broadcast %6 : vector<1x1xf32> to vector<2x1xf32>
    %385 = arith.addf %383, %384 : vector<2x1xf32>
    %c0_76 = arith.constant 0 : index
    %c0_77 = arith.constant 0 : index
    %386 = vector.load %arg3[%c0_76, %c0_77] : memref<2x1xf32, #tpu.memory_space<vmem>>, vector<2x1xf32>
    tpu.vector_store %arg3[%c0_76, %c0_77], %385 {strides = array<i32>} : memref<2x1xf32, #tpu.memory_space<vmem>>, vector<2x1xf32>,
    return
  }
}

</mosaic_0001>

<bundles_post_ra>
// kernel: lstm_model_forward.1
= control target key start
LH: loop header
LB: loop body
LE: loop exit
PB: predicated region body
PF: predicated region fallthrough
CT: control target
= control target key end

     0   :  { %8 = vsyncpa [#allocation3], 0  ;;  %s2193_s12 = smov [#allocation2]   ;;  %s2671_s0 = inlined_call_operand.vmem [shape: bf16[16,8], index: 0, kind: input, shape index: {}]   ;;  %s2672_s1 = inlined_call_operand.hbm [shape: bf16[136,512], index: 1, kind: input, shape index: {}]   ;;  %s2673_s2 = inlined_call_operand.vmem [shape: f32[8,256], index: 2, kind: input, shape index: {}]   ;;  %s2674_s3 = inlined_call_operand.vmem [shape: f32[2,1], index: 3, kind: output, shape index: {}]  }
   0x1   :  { %s16_s13 = sshll.u32 %s2193_s12, 4  ;;  %s2169_s16 = scalar_lea.hbm %s2672_s1, 4352  ;;  %s17_s13 = int_to_ptr.vmem [resolvable:$true] %s16_s13 }
   0x2   :  { %p2170_p0 = scmp.ne.s32.totalorder %s2672_s1, %s2169_s16  ;;  %p2173_p1 = scmp.lt.u32.totalorder %s2169_s16, %s2672_s1 }
   0x4   :  { %p2175_p2 = pnand %p2173_p1, %p2170_p0 }
   0x6   :  { %2178 = shalt.err (!%p2175_p2)
}
   0x7   :  { %s2179_s21 = scalar_lea.vmem %s17_s13, 4352  ;;  %p2184_p4 = scmp.lt.s32.totalorder %s17_s13, %s17_s13 }
   0x8   :  { %p2180_p3 = scmp.ne.s32.totalorder %s17_s13, %s2179_s21  ;;  %p2185_p5 = scmp.lt.s32.totalorder %s2179_s21, %s2179_s21 }
   0xa   :  { %p2186_p6 = por %p2185_p5, %p2184_p4 }
   0xc   :  { %p2187_p7 = pnand %p2186_p6, %p2180_p3 }
   0xe   :  { %2190 = shalt.err (!%p2187_p7)
}
   0xf   :  { %s2194_s22 = smov 256   ;;  %s2195_s23 = smov 16  }
  0x10   :  { %22 = dma.hbm_to_vmem [thread:$0]  %s2672_s1, 4352, %s17_s13, [#allocation3], %s2194_s22, %s2194_s22, %s2195_s23  }
  0x11   :  { %2191 = dma.done.wait [#allocation3], 4352  }
  0x12   :  { %2192 = vsyncadd [#allocation3], 4294962944  ;;  %v2196_v0 = vmov 0   ;;  %v29_v1 = vld [vmem:[#allocation2] sm:$0xff]  ;;  %vm86_vm0 = vcmask 1043456   ;;  %vm82_vm1 = vcmask 64512   ;;  %v62_v6 = vlaneseq }
  0x13   :  { %125 = vmatprep.mubr.bf16.mxu0 %v2196_v0  ;;  %297 = vmatprep.mubr.bf16.mxu1 %v2196_v0  ;;  %v1845_v2 = vcombine.high %v29_v1, %v29_v1  ;;  %v1844_v3 = vcombine.low %v29_v1, %v29_v1  ;;  %v1949_v4 = vld [vmem:[%s2671_s0] sm:$0xff]   ;;  %s2197_s0 = smov 64   ;;  %v2261_v34 = vld [vmem:[#allocation2 + $0x1c] ss:$16 sps:$4 sm:$0xff]   ;;  %v2265_v36 = vld [vmem:[#allocation2 + $0x18] ss:$16 sps:$4 sm:$0xff]  }
  0x14   :  { %v2236_v7 = vshrl.u32 %v62_v6, 7  ;;  %v54_v9 = vld [vmem:[%s2673_s2] ss:$8 sm:$0x3]  ;;  %v2259_v33 = vld [vmem:[#allocation2 + $0x14] ss:$16 sps:$4 sm:$0xff]  }
  0x15   :  { %1846 = vmatprep.subr.msk.bf16.mxu0 %vm86_vm0, %v1845_v2  ;;  %v88_v5 = vsel %vm86_vm0, %v1844_v3, 0  ;;  %v2263_v35 = vld [vmem:[#allocation2 + $0x10] ss:$16 sps:$4 sm:$0xff]   ;;  %v2267_v37 = vld [vmem:[#allocation2 + $0x34] ss:$16 sps:$4 sm:$0xff]   ;;  %265 = vmatprep.subr.bf16.mxu1 %v2259_v33  ;;  %vm261_vm2 = vcmask 523264  }
  0x16   :  { %94 = vmatpush1.bf16.msra.mxu0 %v88_v5  ;;  %v68_v8 = vsub.s32 1, %v2236_v7  ;;  %v64_v10 = vsub.s32 0, %v2236_v7  ;;  %v2269_v38 = vld [vmem:[#allocation2 + $0x3c] ss:$16 sps:$4 sm:$0xff]   ;;  %266 = vmatpush1.bf16.msra.mxu1 %v2263_v35  ;;  %v2275_v39 = vld [vmem:[#allocation2 + $0x30] ss:$16 sps:$4 sm:$0xff]  }
  0x17   :  { %306 = vmatprep.subr.bf16.mxu0 %v2261_v34  ;;  %v2277_v40 = vld [vmem:[#allocation2 + $0x38] ss:$16 sps:$4 sm:$0xff]   ;;  %267 = vmatprep.subr.bf16.mxu1 %v2267_v37  ;;  %v2281_v41 = vld [vmem:[#allocation2 + $0x54] ss:$16 sps:$4 sm:$0xff]   ;;  %v2283_v42 = vld [vmem:[#allocation2 + $0x5c] ss:$16 sps:$4 sm:$0xff]  }
  0x18   :  { %v69_v11 = vrot.slane %v54_v9, %v68_v8  ;;  %v65_v13 = vrot.slane %v54_v9, %v64_v10  ;;  %v2287_v43 = vld [vmem:[#allocation2 + $0x50] ss:$16 sps:$4 sm:$0xff]   ;;  %v2289_v44 = vld [vmem:[#allocation2 + $0x58] ss:$16 sps:$4 sm:$0xff]   ;;  %v2295_v46 = vld [vmem:[#allocation2 + $0x74] ss:$16 sps:$4 sm:$0xff]  }
  0x19   :  { %1847 = vmatmul.mubr.msk.bf16.vlgmr.msra.gmra.mrb[0].mxu0 %vm82_vm1, %v1949_v4  ;;  %v2297_v47 = vld [vmem:[#allocation2 + $0x7c] ss:$16 sps:$4 sm:$0xff]   ;;  %v2299_v49 = vld [vmem:[#allocation2 + $0x70] ss:$16 sps:$4 sm:$0xff]   ;;  %v2301_v50 = vld [vmem:[#allocation2 + $0x78] ss:$16 sps:$4 sm:$0xff]  }
  0x1a   :  { %338 = vmatprep.mubr.bf16.mxu0 %v2196_v0  ;;  %307 = vmatpush1.bf16.msra.mxu0 %v2265_v36  ;;  %v1842_v56 = vld [vmem:[%s2673_s2 + $0x1] ss:$8 sm:$0x3]  ;;  %vm1830_vm3 = vcmask 517120   ;;  %vm1835_vm4 = vcmask 1024  }
  0x1b   :  { %308 = vmatprep.subr.bf16.mxu0 %v2269_v38  ;;  %268 = vmatpush1.bf16.msra.mxu1 %v2275_v39  ;;  %v2337_v57 = vrot.slane %v1842_v56, %v68_v8 }
  0x1c   :  { %269 = vmatprep.subr.bf16.mxu1 %v2281_v41 }
  0x1e   :  { %309 = vmatpush1.bf16.msra.mxu0 %v2277_v40 }
  0x1f   :  { %310 = vmatprep.subr.bf16.mxu0 %v2283_v42  ;;  %270 = vmatpush1.bf16.msra.mxu1 %v2287_v43 }
  0x20   :  { %271 = vmatprep.subr.bf16.mxu1 %v2295_v46 }
  0x22   :  { %311 = vmatpush1.bf16.msra.mxu0 %v2289_v44 }
  0x23   :  { %312 = vmatprep.subr.bf16.mxu0 %v2297_v47  ;;  %272 = vmatpush1.bf16.msra.mxu1 %v2299_v49 }
  0x24   :  { %431 = vmatprep.subr.bf16.mxu1 %v2259_v33 }
  0x26   :  { %313 = vmatpush1.bf16.msra.mxu0 %v2301_v50 }
  0x27   :  { %472 = vmatprep.subr.bf16.mxu0 %v2261_v34 }
  0xec   :  { %v127_v12 = vpop.f32.mrb[0].mxu0 }
  0xed   :  { %v129_v14 = vpop.f32.mrb[1].mxu0  ;;  %v2255_v26 = vadd.f32 %v127_v12, %v65_v13 }
  0xee   :  { %v2247_v15 = vadd.f32 %v129_v14, %v69_v11  ;;  %v131_v16 = vpop.f32.mrb[2].mxu0 }
  0xef   :  { %v2249_v17 = vadd.f32 %v131_v16, %v65_v13  ;;  %v133_v18 = vpop.f32.mrb[3].mxu0  ;;  %v1848_v27 = vmul.f32 -1.442695, %v2255_v26 }
  0xf0   :  { %v1849_v19 = vmul.f32 -1.442695, %v2247_v15  ;;  %v2252_v20 = vadd.f32 %v133_v18, %v69_v11 }
  0xf2   :  { %1986 = vpow2.f32 %v1849_v19 }
  0xfc   :  { %v1987_v21 = vpop.eup %1986 }
  0xfd   :  { %v156_v22 = vadd.f32 1.0, %v1987_v21 }
  0xff   :  { %1988 = vrcp.f32 %v156_v22 }
 0x100   :  { %1990 = vpow2.f32 %v1848_v27 }
 0x109   :  { %v1989_v23 = vpop.eup %1988 }
 0x10a   :  { %v161_v24 = vmul.f32 2.0, %v1989_v23  ;;  %v1991_v28 = vpop.eup %1990 }
 0x10b   :  { %v155_v29 = vadd.f32 1.0, %v1991_v28 }
 0x10c   :  { %v1850_v25 = vadd.f32 -1.0, %v161_v24 }
 0x10d   :  { %1992 = vrcp.f32 %v155_v29 }
 0x10e   :  { %165 = vrot.lane.b32.xlu0 %v1850_v25, %s2197_s0 }
 0x117   :  { %v1993_v30 = vpop.eup %1992 }
 0x118   :  { %v163_v45 = vmul.f32 0.0, %v1993_v30 }
 0x180   :  { %v166_v31 = vpop.permute.xlu0 %165 }
 0x181   :  { %v168_v32 = vmul.f32 %v1993_v30, %v166_v31 }
 0x183   :  { %170 = vrot.lane.b32.xlu0 %v168_v32, %s2197_s0 }
 0x1f5   :  { %v171_v48 = vpop.permute.xlu0 %170 }
 0x1f6   :  { %v2303_v51 = vadd.f32 %v171_v48, %v163_v45 }
 0x1f8   :  { %1994 = vtanh.f32 %v2303_v51 }
 0x202   :  { %v1995_v52 = vpop.eup %1994 }
 0x203   :  { %176 = vrot.lane.b32.xlu1 %v1995_v52, %s2197_s0 }
 0x275   :  { %v177_v53 = vpop.permute.xlu1 %176 }
 0x276   :  { %v179_v54 = vmul.f32 %v1989_v23, %v177_v53  ;;  %v2348_v23 = vrot.slane %v1842_v56, %v64_v10 }
 0x278   :  { %v180_v55 = vpack.c.bf16 %v179_v54, %v179_v54 }
 0x27a   :  { %1867 = vmatmul.mubr.msk.bf16.vlgmr.msra.gmra.mrb[0].mxu1 %vm261_vm2, %v180_v55  ;;  %1868 = vmatmul.mubr.msk.bf16.vlgmr.msra.gmra.mrb[4].mxu0 %vm261_vm2, %v180_v55  ;;  %v406_v55 = vrot.slane %v2303_v51, 6 }
 0x27b   :  { %432 = vmatpush1.bf16.msra.mxu1 %v2263_v35  ;;  %473 = vmatpush1.bf16.msra.mxu0 %v2265_v36 }
 0x27c   :  { %433 = vmatprep.subr.bf16.mxu1 %v2267_v37  ;;  %474 = vmatprep.subr.bf16.mxu0 %v2269_v38 }
 0x27d   :  { %463 = vmatprep.mubr.bf16.mxu1 %v2196_v0  ;;  %504 = vmatprep.mubr.bf16.mxu0 %v2196_v0 }
 0x27f   :  { %434 = vmatpush1.bf16.msra.mxu1 %v2275_v39  ;;  %475 = vmatpush1.bf16.msra.mxu0 %v2277_v40 }
 0x280   :  { %435 = vmatprep.subr.bf16.mxu1 %v2281_v41  ;;  %476 = vmatprep.subr.bf16.mxu0 %v2283_v42 }
 0x283   :  { %436 = vmatpush1.bf16.msra.mxu1 %v2287_v43  ;;  %477 = vmatpush1.bf16.msra.mxu0 %v2289_v44 }
 0x284   :  { %437 = vmatprep.subr.bf16.mxu1 %v2295_v46  ;;  %478 = vmatprep.subr.bf16.mxu0 %v2297_v47 }
 0x287   :  { %438 = vmatpush1.bf16.msra.mxu1 %v2299_v49  ;;  %479 = vmatpush1.bf16.msra.mxu0 %v2301_v50 }
 0x288   :  { %679 = vmatprep.subr.bf16.mxu0 %v2259_v33 }
 0x34d   :  { %v299_v58 = vpop.f32.mrb[0].mxu1  ;;  %v340_v59 = vpop.f32.mrb[4].mxu0 }
 0x34e   :  { %v301_v60 = vpop.f32.mrb[1].mxu1  ;;  %v342_v61 = vpop.f32.mrb[5].mxu0  ;;  %v385_v24 = vrot.slane %v299_v58, 6  ;;  %v349_v25 = vadd.f32 %v340_v59, %v2348_v23 }
 0x34f   :  { %v386_v62 = vrot.slane %v301_v60, 6  ;;  %v350_v63 = vadd.f32 %v342_v61, %v2337_v57  ;;  %v303_v1 = vpop.f32.mrb[2].mxu1  ;;  %v344_v2 = vpop.f32.mrb[6].mxu0 }
 0x350   :  { %v304_v3 = vpop.f32.mrb[3].mxu1  ;;  %v345_v4 = vpop.f32.mrb[7].mxu0  ;;  %v389_v27 = vadd.f32 %v385_v24, %v2255_v26  ;;  %v1869_v28 = vmul.f32 -1.442695, %v349_v25 }
 0x351   :  { %v390_v5 = vadd.f32 %v386_v62, %v2247_v15  ;;  %v1870_v6 = vmul.f32 -1.442695, %v350_v63  ;;  %v2361_v63 = vld [vmem:[#allocation2 + $0x94] ss:$16 sps:$4 sm:$0xff]  }
 0x352   :  { %v1872_v29 = vmul.f32 -1.442695, %v389_v27  ;;  %556 = vmatprep.subr.bf16.mxu1 %v2361_v63 }
 0x353   :  { %v1873_v9 = vmul.f32 -1.442695, %v390_v5  ;;  %1996 = vpow2.f32 %v1870_v6  ;;  %v2366_v5 = vld [vmem:[#allocation2 + $0x90] ss:$16 sps:$4 sm:$0xff]  }
 0x355   :  { %1998 = vpow2.f32 %v1873_v9  ;;  %v2368_v9 = vld [vmem:[#allocation2 + $0xb4] ss:$16 sps:$4 sm:$0xff]  }
 0x35d   :  { %v1997_v11 = vpop.eup %1996 }
 0x35e   :  { %v358_v8 = vadd.f32 1.0, %v1997_v11  ;;  %v2373_v11 = vld [vmem:[#allocation2 + $0xb0] ss:$16 sps:$4 sm:$0xff]  }
 0x35f   :  { %v1999_v12 = vpop.eup %1998 }
 0x360   :  { %v398_v13 = vadd.f32 1.0, %v1999_v12  ;;  %2000 = vrcp.f32 %v358_v8  ;;  %v2377_v8 = vld [vmem:[#allocation2 + $0xd4] ss:$16 sps:$4 sm:$0xff]   ;;  %v2383_v12 = vld [vmem:[#allocation2 + $0xd0] ss:$16 sps:$4 sm:$0xff]  }
 0x362   :  { %2002 = vrcp.f32 %v398_v13  ;;  %v2386_v13 = vld [vmem:[#allocation2 + $0xf4] ss:$16 sps:$4 sm:$0xff]  }
 0x363   :  { %2004 = vpow2.f32 %v1869_v28 }
 0x364   :  { %2006 = vpow2.f32 %v1872_v29 }
 0x36a   :  { %v2341_v14 = vpop.eup %2000 }
 0x36b   :  { %v363_v16 = vmul.f32 2.0, %v2341_v14 }
 0x36c   :  { %v2003_v18 = vpop.eup %2002 }
 0x36d   :  { %v1871_v19 = vadd.f32 -1.0, %v363_v16  ;;  %v403_v21 = vmul.f32 2.0, %v2003_v18  ;;  %v2005_v30 = vpop.eup %2004 }
 0x36e   :  { %v2007_v31 = vpop.eup %2006  ;;  %v357_v32 = vadd.f32 1.0, %v2005_v30 }
 0x36f   :  { %367 = vrot.lane.b32.xlu0 %v1871_v19, %s2197_s0  ;;  %v1874_v22 = vadd.f32 -1.0, %v403_v21  ;;  %v397_v45 = vadd.f32 1.0, %v2007_v31 }
 0x370   :  { %2008 = vrcp.f32 %v357_v32 }
 0x371   :  { %410 = vrot.lane.b32.xlu1 %v1874_v22, %s2197_s0  ;;  %2010 = vrcp.f32 %v397_v45 }
 0x37a   :  { %v2009_v48 = vpop.eup %2008 }
 0x37b   :  { %v2011_v10 = vpop.eup %2010  ;;  %v365_v56 = vmul.f32 0.0, %v2009_v48 }
 0x37c   :  { %v408_v60 = vmul.f32 %v2011_v10, %v406_v55 }
 0x3e1   :  { %v368_v52 = vpop.permute.xlu0 %367 }
 0x3e2   :  { %v370_v7 = vmul.f32 %v2009_v48, %v368_v52 }
 0x3e3   :  { %v411_v53 = vpop.permute.xlu1 %410 }
 0x3e4   :  { %v413_v54 = vmul.f32 %v2011_v10, %v411_v53  ;;  %372 = vrot.lane.b32.xlu0 %v370_v7, %s2197_s0 }
 0x3e6   :  { %415 = vrot.lane.b32.xlu1 %v413_v54, %s2197_s0 }
 0x456   :  { %v373_v58 = vpop.permute.xlu0 %372 }
 0x457   :  { %v2355_v59 = vadd.f32 %v373_v58, %v365_v56 }
 0x458   :  { %v416_v61 = vpop.permute.xlu1 %415 }
 0x459   :  { %2012 = vtanh.f32 %v2355_v59  ;;  %v2358_v62 = vadd.f32 %v416_v61, %v408_v60 }
 0x45b   :  { %2014 = vtanh.f32 %v2358_v62 }
 0x463   :  { %v2013_v1 = vpop.eup %2012 }
 0x464   :  { %378 = vrot.lane.b32.xlu0 %v2013_v1, %s2197_s0 }
 0x465   :  { %v2015_v51 = vpop.eup %2014 }
 0x466   :  { %421 = vrot.lane.b32.xlu1 %v2015_v51, %s2197_s0 }
 0x4d6   :  { %v379_v16 = vpop.permute.xlu0 %378 }
 0x4d7   :  { %v381_v19 = vmul.f32 %v2341_v14, %v379_v16 }
 0x4d8   :  { %v422_v2 = vpop.permute.xlu1 %421 }
 0x4d9   :  { %v424_v3 = vmul.f32 %v2003_v18, %v422_v2  ;;  %v2391_v18 = vld [vmem:[#allocation2 + $0xf0] ss:$16 sps:$4 sm:$0xff]   ;;  %v382_v21 = vpack.c.bf16 %v381_v19, %v381_v19 }
 0x4db   :  { %v425_v4 = vpack.c.bf16 %v424_v3, %v424_v3 }
 0x4dd   :  { %v427_v6 = vrot.slane %v425_v4, 1 }
 0x4df   :  { %1875 = vmatmul.mubr.msk.bf16.vlgmr.msra.gmra.mrb[4].mxu1 %vm261_vm2, %v427_v6  ;;  %1876 = vmatmul.mubr.msk.bf16.vlgmr.msra.gmra.mrb[8].mxu0 %vm261_vm2, %v427_v6 }
 0x4e0   :  { %557 = vmatpush1.bf16.msra.mxu1 %v2366_v5  ;;  %588 = vmatprep.mubr.bf16.mxu1 %v2196_v0 }
 0x4e1   :  { %558 = vmatprep.subr.bf16.mxu1 %v2368_v9  ;;  %680 = vmatpush1.bf16.msra.mxu0 %v2263_v35 }
 0x4e2   :  { %681 = vmatprep.subr.bf16.mxu0 %v2267_v37  ;;  %711 = vmatprep.mubr.bf16.mxu0 %v2196_v0 }
 0x4e4   :  { %559 = vmatpush1.bf16.msra.mxu1 %v2373_v11 }
 0x4e5   :  { %560 = vmatprep.subr.bf16.mxu1 %v2377_v8  ;;  %682 = vmatpush1.bf16.msra.mxu0 %v2275_v39 }
 0x4e6   :  { %683 = vmatprep.subr.bf16.mxu0 %v2281_v41 }
 0x4e8   :  { %561 = vmatpush1.bf16.msra.mxu1 %v2383_v12 }
 0x4e9   :  { %562 = vmatprep.subr.bf16.mxu1 %v2386_v13  ;;  %684 = vmatpush1.bf16.msra.mxu0 %v2287_v43 }
 0x4ea   :  { %685 = vmatprep.subr.bf16.mxu0 %v2295_v46 }
 0x4ec   :  { %563 = vmatpush1.bf16.msra.mxu1 %v2391_v18 }
 0x4ed   :  { %720 = vmatprep.subr.bf16.mxu1 %v2261_v34  ;;  %686 = vmatpush1.bf16.msra.mxu0 %v2299_v49 }
 0x4ee   :  { %764 = vmatprep.subr.bf16.mxu0 %v2361_v63 }
 0x4ef   :  { %1885 = vmatmul.mubr.msk.bf16.vlgmr.msra.gmra.mrb[8].mxu1 %vm261_vm2, %v382_v21 }
 0x4f0   :  { %721 = vmatpush1.bf16.msra.mxu1 %v2265_v36  ;;  %752 = vmatprep.mubr.bf16.mxu1 %v2196_v0 }
 0x4f1   :  { %722 = vmatprep.subr.bf16.mxu1 %v2269_v38 }
 0x4f4   :  { %723 = vmatpush1.bf16.msra.mxu1 %v2277_v40 }
 0x4f5   :  { %724 = vmatprep.subr.bf16.mxu1 %v2283_v42 }
 0x4f8   :  { %725 = vmatpush1.bf16.msra.mxu1 %v2289_v44 }
 0x4f9   :  { %726 = vmatprep.subr.bf16.mxu1 %v2297_v47 }
 0x4fc   :  { %727 = vmatpush1.bf16.msra.mxu1 %v2301_v50 }
 0x4fd   :  { %887 = vmatprep.subr.bf16.mxu1 %v2259_v33 }
 0x5b2   :  { %v465_v14 = vpop.f32.mrb[4].mxu1  ;;  %v506_v22 = vpop.f32.mrb[8].mxu0 }
 0x5b3   :  { %v467_v24 = vpop.f32.mrb[5].mxu1  ;;  %v508_v25 = vpop.f32.mrb[9].mxu0  ;;  %v633_v19 = vrot.slane %v465_v14, 4 }
 0x5b4   :  { %v634_v27 = vrot.slane %v467_v24, 4  ;;  %v469_v28 = vpop.f32.mrb[6].mxu1  ;;  %v510_v29 = vpop.f32.mrb[10].mxu0 }
 0x5b5   :  { %v470_v30 = vpop.f32.mrb[7].mxu1  ;;  %v511_v31 = vpop.f32.mrb[11].mxu0  ;;  %v637_v21 = vadd.f32 %v633_v19, %v2255_v26 }
 0x5b6   :  { %v638_v32 = vadd.f32 %v634_v27, %v2247_v15 }
 0x5b8   :  { %v1890_v45 = vmul.f32 -1.442695, %v638_v32 }
 0x5ba   :  { %2016 = vpow2.f32 %v1890_v45 }
 0x5c2   :  { %v590_v48 = vpop.f32.mrb[8].mxu1 }
 0x5c3   :  { %v591_v52 = vadd.f32 %v590_v48, %v506_v22  ;;  %v592_v7 = vpop.f32.mrb[9].mxu1  ;;  %v1889_v22 = vmul.f32 -1.442695, %v637_v21 }
 0x5c4   :  { %v2017_v10 = vpop.eup %2016  ;;  %v593_v53 = vadd.f32 %v592_v7, %v508_v25  ;;  %v594_v54 = vpop.f32.mrb[10].mxu1 }
 0x5c5   :  { %v646_v55 = vadd.f32 1.0, %v2017_v10  ;;  %v595_v56 = vpop.f32.mrb[11].mxu1  ;;  %v597_v24 = vadd.f32 %v591_v52, %v2348_v23  ;;  %v654_v52 = vrot.slane %v2358_v62, 6 }
 0x5c6   :  { %v598_v58 = vadd.f32 %v593_v53, %v2337_v57 }
 0x5c7   :  { %2018 = vrcp.f32 %v646_v55  ;;  %v1886_v27 = vmul.f32 -1.442695, %v597_v24 }
 0x5c8   :  { %v1887_v60 = vmul.f32 -1.442695, %v598_v58 }
 0x5ca   :  { %2020 = vpow2.f32 %v1887_v60 }
 0x5d1   :  { %v2019_v61 = vpop.eup %2018 }
 0x5d2   :  { %v651_v1 = vmul.f32 2.0, %v2019_v61 }
 0x5d4   :  { %v2021_v51 = vpop.eup %2020  ;;  %v1891_v2 = vadd.f32 -1.0, %v651_v1 }
 0x5d5   :  { %v606_v3 = vadd.f32 1.0, %v2021_v51 }
 0x5d6   :  { %658 = vrot.lane.b32.xlu1 %v1891_v2, %s2197_s0 }
 0x5d7   :  { %2022 = vrcp.f32 %v606_v3 }
 0x5d8   :  { %2024 = vpow2.f32 %v1889_v22 }
 0x5d9   :  { %2026 = vpow2.f32 %v1886_v27 }
 0x5e1   :  { %v2023_v4 = vpop.eup %2022 }
 0x5e2   :  { %v611_v6 = vmul.f32 2.0, %v2023_v4  ;;  %v2025_v25 = vpop.eup %2024 }
 0x5e3   :  { %v645_v28 = vadd.f32 1.0, %v2025_v25  ;;  %v2027_v29 = vpop.eup %2026 }
 0x5e4   :  { %v1888_v16 = vadd.f32 -1.0, %v611_v6  ;;  %v605_v45 = vadd.f32 1.0, %v2027_v29 }
 0x5e5   :  { %2028 = vrcp.f32 %v645_v28 }
 0x5e6   :  { %615 = vrot.lane.b32.xlu0 %v1888_v16, %s2197_s0  ;;  %2030 = vrcp.f32 %v605_v45 }
 0x5ef   :  { %v2029_v30 = vpop.eup %2028 }
 0x5f0   :  { %v2031_v14 = vpop.eup %2030  ;;  %v656_v10 = vmul.f32 %v2029_v30, %v654_v52 }
 0x5f1   :  { %v613_v56 = vmul.f32 %v2031_v14, %v2355_v59 }
 0x648   :  { %v659_v31 = vpop.permute.xlu1 %658 }
 0x649   :  { %v661_v32 = vmul.f32 %v2029_v30, %v659_v31 }
 0x64b   :  { %663 = vrot.lane.b32.xlu1 %v661_v32, %s2197_s0 }
 0x658   :  { %v616_v48 = vpop.permute.xlu0 %615 }
 0x659   :  { %v618_v7 = vmul.f32 %v2031_v14, %v616_v48 }
 0x65b   :  { %620 = vrot.lane.b32.xlu0 %v618_v7, %s2197_s0 }
 0x6bd   :  { %v664_v53 = vpop.permute.xlu1 %663 }
 0x6be   :  { %v2420_v54 = vadd.f32 %v664_v53, %v656_v10 }
 0x6c0   :  { %2032 = vtanh.f32 %v2420_v54 }
 0x6ca   :  { %v2033_v55 = vpop.eup %2032 }
 0x6cb   :  { %669 = vrot.lane.b32.xlu1 %v2033_v55, %s2197_s0 }
 0x6cd   :  { %v621_v58 = vpop.permute.xlu0 %620 }
 0x6ce   :  { %v2425_v60 = vadd.f32 %v621_v58, %v613_v56 }
 0x6d0   :  { %2034 = vtanh.f32 %v2425_v60 }
 0x6da   :  { %v2035_v1 = vpop.eup %2034 }
 0x6db   :  { %626 = vrot.lane.b32.xlu0 %v2035_v1, %s2197_s0 }
 0x73d   :  { %v670_v62 = vpop.permute.xlu1 %669 }
 0x73e   :  { %v672_v51 = vmul.f32 %v2019_v61, %v670_v62 }
 0x740   :  { %v673_v2 = vpack.c.bf16 %v672_v51, %v672_v51 }
 0x742   :  { %v675_v3 = vrot.slane %v673_v2, 2 }
 0x744   :  { %1892 = vmatmul.mubr.msk.bf16.vlgmr.msra.gmra.mrb[12].mxu0 %vm261_vm2, %v675_v3  ;;  %1893 = vmatmul.mubr.msk.bf16.vlgmr.msra.gmra.mrb[12].mxu1 %vm261_vm2, %v675_v3 }
 0x745   :  { %765 = vmatpush1.bf16.msra.mxu0 %v2366_v5  ;;  %796 = vmatprep.mubr.bf16.mxu0 %v2196_v0 }
 0x746   :  { %766 = vmatprep.subr.bf16.mxu0 %v2368_v9  ;;  %888 = vmatpush1.bf16.msra.mxu1 %v2263_v35 }
 0x747   :  { %889 = vmatprep.subr.bf16.mxu1 %v2267_v37  ;;  %919 = vmatprep.mubr.bf16.mxu1 %v2196_v0 }
 0x749   :  { %767 = vmatpush1.bf16.msra.mxu0 %v2373_v11 }
 0x74a   :  { %768 = vmatprep.subr.bf16.mxu0 %v2377_v8  ;;  %890 = vmatpush1.bf16.msra.mxu1 %v2275_v39 }
 0x74b   :  { %891 = vmatprep.subr.bf16.mxu1 %v2281_v41 }
 0x74d   :  { %769 = vmatpush1.bf16.msra.mxu0 %v2383_v12  ;;  %v627_v59 = vpop.permute.xlu0 %626 }
 0x74e   :  { %v629_v61 = vmul.f32 %v2023_v4, %v627_v59  ;;  %770 = vmatprep.subr.bf16.mxu0 %v2386_v13  ;;  %892 = vmatpush1.bf16.msra.mxu1 %v2287_v43 }
 0x74f   :  { %893 = vmatprep.subr.bf16.mxu1 %v2295_v46 }
 0x750   :  { %v630_v6 = vpack.c.bf16 %v629_v61, %v629_v61 }
 0x751   :  { %771 = vmatpush1.bf16.msra.mxu0 %v2391_v18 }
 0x752   :  { %928 = vmatprep.subr.bf16.mxu0 %v2261_v34  ;;  %894 = vmatpush1.bf16.msra.mxu1 %v2299_v49 }
 0x753   :  { %972 = vmatprep.subr.bf16.mxu1 %v2361_v63 }
 0x754   :  { %1894 = vmatmul.mubr.msk.bf16.vlgmr.msra.gmra.mrb[16].mxu0 %vm261_vm2, %v630_v6 }
 0x755   :  { %929 = vmatpush1.bf16.msra.mxu0 %v2265_v36  ;;  %960 = vmatprep.mubr.bf16.mxu0 %v2196_v0 }
 0x756   :  { %930 = vmatprep.subr.bf16.mxu0 %v2269_v38 }
 0x759   :  { %931 = vmatpush1.bf16.msra.mxu0 %v2277_v40 }
 0x75a   :  { %932 = vmatprep.subr.bf16.mxu0 %v2283_v42 }
 0x75d   :  { %933 = vmatpush1.bf16.msra.mxu0 %v2289_v44 }
 0x75e   :  { %934 = vmatprep.subr.bf16.mxu0 %v2297_v47 }
 0x761   :  { %935 = vmatpush1.bf16.msra.mxu0 %v2301_v50 }
 0x762   :  { %1087 = vmatprep.subr.bf16.mxu0 %v2259_v33 }
 0x817   :  { %v713_v4 = vpop.f32.mrb[12].mxu0  ;;  %v754_v16 = vpop.f32.mrb[12].mxu1 }
 0x818   :  { %v715_v19 = vpop.f32.mrb[13].mxu0  ;;  %v756_v21 = vpop.f32.mrb[13].mxu1  ;;  %v841_v59 = vrot.slane %v713_v4, 2 }
 0x819   :  { %v842_v22 = vrot.slane %v715_v19, 2  ;;  %v717_v24 = vpop.f32.mrb[14].mxu0  ;;  %v758_v25 = vpop.f32.mrb[14].mxu1 }
 0x81a   :  { %v718_v27 = vpop.f32.mrb[15].mxu0  ;;  %v759_v28 = vpop.f32.mrb[15].mxu1  ;;  %v845_v61 = vadd.f32 %v841_v59, %v2255_v26 }
 0x81b   :  { %v846_v29 = vadd.f32 %v842_v22, %v2247_v15 }
 0x81c   :  { %v1898_v6 = vmul.f32 -1.442695, %v845_v61 }
 0x81d   :  { %v1899_v30 = vmul.f32 -1.442695, %v846_v29 }
 0x81f   :  { %2036 = vpow2.f32 %v1899_v30 }
 0x827   :  { %v798_v31 = vpop.f32.mrb[16].mxu0 }
 0x828   :  { %v799_v32 = vadd.f32 %v798_v31, %v754_v16  ;;  %v800_v45 = vpop.f32.mrb[17].mxu0  ;;  %v862_v31 = vrot.slane %v2420_v54, 6 }
 0x829   :  { %v2037_v14 = vpop.eup %2036  ;;  %v801_v48 = vadd.f32 %v800_v45, %v756_v21  ;;  %v802_v7 = vpop.f32.mrb[18].mxu0 }
 0x82a   :  { %v854_v52 = vadd.f32 1.0, %v2037_v14  ;;  %v803_v10 = vpop.f32.mrb[19].mxu0  ;;  %v805_v16 = vadd.f32 %v799_v32, %v2348_v23 }
 0x82b   :  { %v806_v53 = vadd.f32 %v801_v48, %v2337_v57 }
 0x82c   :  { %2038 = vrcp.f32 %v854_v52  ;;  %v1895_v21 = vmul.f32 -1.442695, %v805_v16 }
 0x82d   :  { %v1896_v55 = vmul.f32 -1.442695, %v806_v53 }
 0x82f   :  { %2040 = vpow2.f32 %v1896_v55 }
 0x836   :  { %v2039_v56 = vpop.eup %2038 }
 0x837   :  { %v859_v58 = vmul.f32 2.0, %v2039_v56 }
 0x839   :  { %v2041_v1 = vpop.eup %2040  ;;  %v1900_v62 = vadd.f32 -1.0, %v859_v58 }
 0x83a   :  { %v814_v15 = vadd.f32 1.0, %v2041_v1 }
 0x83b   :  { %866 = vrot.lane.b32.xlu1 %v1900_v62, %s2197_s0 }
 0x83c   :  { %2042 = vrcp.f32 %v814_v15 }
 0x83d   :  { %2044 = vpow2.f32 %v1898_v6 }
 0x83e   :  { %2046 = vpow2.f32 %v1895_v21 }
 0x846   :  { %v2043_v51 = vpop.eup %2042 }
 0x847   :  { %v819_v2 = vmul.f32 2.0, %v2043_v51  ;;  %v2045_v19 = vpop.eup %2044 }
 0x848   :  { %v853_v22 = vadd.f32 1.0, %v2045_v19  ;;  %v2047_v24 = vpop.eup %2046 }
 0x849   :  { %v1897_v3 = vadd.f32 -1.0, %v819_v2  ;;  %v813_v29 = vadd.f32 1.0, %v2047_v24 }
 0x84a   :  { %2048 = vrcp.f32 %v853_v22 }
 0x84b   :  { %823 = vrot.lane.b32.xlu0 %v1897_v3, %s2197_s0  ;;  %2050 = vrcp.f32 %v813_v29 }
 0x854   :  { %v2049_v25 = vpop.eup %2048 }
 0x855   :  { %v2051_v4 = vpop.eup %2050  ;;  %v864_v32 = vmul.f32 %v2049_v25, %v862_v31 }
 0x856   :  { %v821_v7 = vmul.f32 %v2051_v4, %v2425_v60 }
 0x8ad   :  { %v867_v27 = vpop.permute.xlu1 %866 }
 0x8ae   :  { %v869_v28 = vmul.f32 %v2049_v25, %v867_v27 }
 0x8b0   :  { %871 = vrot.lane.b32.xlu1 %v869_v28, %s2197_s0 }
 0x8bd   :  { %v824_v30 = vpop.permute.xlu0 %823 }
 0x8be   :  { %v826_v26 = vmul.f32 %v2051_v4, %v824_v30 }
 0x8c0   :  { %828 = vrot.lane.b32.xlu0 %v826_v26, %s2197_s0 }
 0x922   :  { %v872_v45 = vpop.permute.xlu1 %871 }
 0x923   :  { %v2468_v14 = vadd.f32 %v872_v45, %v864_v32 }
 0x925   :  { %2052 = vtanh.f32 %v2468_v14 }
 0x92f   :  { %v2053_v48 = vpop.eup %2052 }
 0x930   :  { %877 = vrot.lane.b32.xlu1 %v2053_v48, %s2197_s0 }
 0x932   :  { %v829_v52 = vpop.permute.xlu0 %828 }
 0x933   :  { %v2473_v10 = vadd.f32 %v829_v52, %v821_v7 }
 0x935   :  { %2054 = vtanh.f32 %v2473_v10 }
 0x93f   :  { %v2055_v53 = vpop.eup %2054 }
 0x940   :  { %834 = vrot.lane.b32.xlu0 %v2055_v53, %s2197_s0 }
 0x9a2   :  { %v878_v54 = vpop.permute.xlu1 %877 }
 0x9a3   :  { %v880_v55 = vmul.f32 %v2039_v56, %v878_v54 }
 0x9a5   :  { %v881_v58 = vpack.c.bf16 %v880_v55, %v880_v55 }
 0x9a7   :  { %v883_v1 = vrot.slane %v881_v58, 3 }
 0x9a9   :  { %1901 = vmatmul.mubr.msk.bf16.vlgmr.msra.gmra.mrb[16].mxu1 %vm261_vm2, %v883_v1  ;;  %1902 = vmatmul.mubr.msk.bf16.vlgmr.msra.gmra.mrb[20].mxu0 %vm261_vm2, %v883_v1 }
 0x9aa   :  { %973 = vmatpush1.bf16.msra.mxu1 %v2366_v5  ;;  %1004 = vmatprep.mubr.bf16.mxu1 %v2196_v0 }
 0x9ab   :  { %974 = vmatprep.subr.bf16.mxu1 %v2368_v9  ;;  %1088 = vmatpush1.bf16.msra.mxu0 %v2263_v35 }
 0x9ac   :  { %1089 = vmatprep.subr.bf16.mxu0 %v2267_v37  ;;  %1119 = vmatprep.mubr.bf16.mxu0 %v2196_v0 }
 0x9ae   :  { %975 = vmatpush1.bf16.msra.mxu1 %v2373_v11 }
 0x9af   :  { %976 = vmatprep.subr.bf16.mxu1 %v2377_v8  ;;  %1090 = vmatpush1.bf16.msra.mxu0 %v2275_v39 }
 0x9b0   :  { %1091 = vmatprep.subr.bf16.mxu0 %v2281_v41 }
 0x9b2   :  { %977 = vmatpush1.bf16.msra.mxu1 %v2383_v12  ;;  %v835_v60 = vpop.permute.xlu0 %834 }
 0x9b3   :  { %v837_v56 = vmul.f32 %v2043_v51, %v835_v60  ;;  %978 = vmatprep.subr.bf16.mxu1 %v2386_v13  ;;  %1092 = vmatpush1.bf16.msra.mxu0 %v2287_v43 }
 0x9b4   :  { %1093 = vmatprep.subr.bf16.mxu0 %v2295_v46 }
 0x9b5   :  { %v838_v62 = vpack.c.bf16 %v837_v56, %v837_v56 }
 0x9b6   :  { %979 = vmatpush1.bf16.msra.mxu1 %v2391_v18 }
 0x9b7   :  { %1128 = vmatprep.subr.bf16.mxu1 %v2261_v34  ;;  %1094 = vmatpush1.bf16.msra.mxu0 %v2299_v49 }
 0x9b8   :  { %1172 = vmatprep.subr.bf16.mxu0 %v2361_v63 }
 0x9b9   :  { %1903 = vmatmul.mubr.msk.bf16.vlgmr.msra.gmra.mrb[20].mxu1 %vm261_vm2, %v838_v62 }
 0x9ba   :  { %1129 = vmatpush1.bf16.msra.mxu1 %v2265_v36  ;;  %1160 = vmatprep.mubr.bf16.mxu1 %v2196_v0 }
 0x9bb   :  { %1130 = vmatprep.subr.bf16.mxu1 %v2269_v38 }
 0x9be   :  { %1131 = vmatpush1.bf16.msra.mxu1 %v2277_v40 }
 0x9bf   :  { %1132 = vmatprep.subr.bf16.mxu1 %v2283_v42 }
 0x9c2   :  { %1133 = vmatpush1.bf16.msra.mxu1 %v2289_v44 }
 0x9c3   :  { %1134 = vmatprep.subr.bf16.mxu1 %v2297_v47 }
 0x9c6   :  { %1135 = vmatpush1.bf16.msra.mxu1 %v2301_v50 }
 0x9c7   :  { %1295 = vmatprep.subr.bf16.mxu1 %v2259_v33 }
 0xa7c   :  { %v921_v15 = vpop.f32.mrb[16].mxu1  ;;  %v962_v51 = vpop.f32.mrb[20].mxu0 }
 0xa7d   :  { %v923_v2 = vpop.f32.mrb[17].mxu1  ;;  %v964_v3 = vpop.f32.mrb[21].mxu0  ;;  %v1047_v58 = vadd.f32 %v921_v15, %v2249_v17 }
 0xa7e   :  { %v1048_v59 = vadd.f32 %v923_v2, %v2252_v20  ;;  %v925_v61 = vpop.f32.mrb[18].mxu1  ;;  %v966_v6 = vpop.f32.mrb[22].mxu0 }
 0xa7f   :  { %v926_v16 = vpop.f32.mrb[19].mxu1  ;;  %v967_v19 = vpop.f32.mrb[23].mxu0  ;;  %v1907_v1 = vmul.f32 -1.442695, %v1047_v58 }
 0xa80   :  { %v1908_v21 = vmul.f32 -1.442695, %v1048_v59 }
 0xa82   :  { %2056 = vpow2.f32 %v1908_v21  ;;  %v1064_v21 = vrot.slane %v2468_v14, 6 }
 0xa8c   :  { %v2057_v22 = vpop.eup %2056  ;;  %v1006_v24 = vpop.f32.mrb[20].mxu1 }
 0xa8d   :  { %v1056_v25 = vadd.f32 1.0, %v2057_v22  ;;  %v1007_v27 = vadd.f32 %v1006_v24, %v962_v51  ;;  %v1008_v28 = vpop.f32.mrb[21].mxu1 }
 0xa8e   :  { %v1009_v29 = vadd.f32 %v1008_v28, %v964_v3  ;;  %v1010_v4 = vpop.f32.mrb[22].mxu1 }
 0xa8f   :  { %2058 = vrcp.f32 %v1056_v25  ;;  %v1011_v30 = vpop.f32.mrb[23].mxu1  ;;  %v1013_v56 = vadd.f32 %v1007_v27, %v2348_v23 }
 0xa90   :  { %v1014_v26 = vadd.f32 %v1009_v29, %v2337_v57 }
 0xa91   :  { %v1904_v51 = vmul.f32 -1.442695, %v1013_v56 }
 0xa92   :  { %v1905_v31 = vmul.f32 -1.442695, %v1014_v26 }
 0xa94   :  { %2060 = vpow2.f32 %v1905_v31 }
 0xa99   :  { %v2059_v32 = vpop.eup %2058 }
 0xa9a   :  { %v1061_v45 = vmul.f32 2.0, %v2059_v32 }
 0xa9c   :  { %v1909_v48 = vadd.f32 -1.0, %v1061_v45 }
 0xa9e   :  { %v2061_v7 = vpop.eup %2060  ;;  %1068 = vrot.lane.b32.xlu1 %v1909_v48, %s2197_s0 }
 0xa9f   :  { %v1022_v52 = vadd.f32 1.0, %v2061_v7 }
 0xaa1   :  { %2062 = vrcp.f32 %v1022_v52 }
 0xaa2   :  { %2064 = vpow2.f32 %v1907_v1 }
 0xaab   :  { %v2063_v53 = vpop.eup %2062 }
 0xaac   :  { %v1027_v54 = vmul.f32 2.0, %v2063_v53  ;;  %v2065_v60 = vpop.eup %2064 }
 0xaad   :  { %v1055_v62 = vadd.f32 1.0, %v2065_v60 }
 0xaae   :  { %v1906_v55 = vadd.f32 -1.0, %v1027_v54 }
 0xaaf   :  { %2066 = vrcp.f32 %v1055_v62 }
 0xab0   :  { %1031 = vrot.lane.b32.xlu0 %v1906_v55, %s2197_s0  ;;  %2068 = vpow2.f32 %v1904_v51 }
 0xab9   :  { %v2067_v2 = vpop.eup %2066 }
 0xaba   :  { %v2069_v59 = vpop.eup %2068  ;;  %v1066_v22 = vmul.f32 %v2067_v2, %v1064_v21 }
 0xabb   :  { %v1021_v6 = vadd.f32 1.0, %v2069_v59 }
 0xabd   :  { %2070 = vrcp.f32 %v1021_v6 }
 0xac7   :  { %v2071_v16 = vpop.eup %2070 }
 0xac8   :  { %v1029_v28 = vmul.f32 %v2071_v16, %v2473_v10 }
 0xb10   :  { %v1069_v3 = vpop.permute.xlu1 %1068 }
 0xb11   :  { %v1071_v61 = vmul.f32 %v2067_v2, %v1069_v3 }
 0xb13   :  { %1073 = vrot.lane.b32.xlu1 %v1071_v61, %s2197_s0 }
 0xb22   :  { %v1032_v19 = vpop.permute.xlu0 %1031 }
 0xb23   :  { %v1034_v15 = vmul.f32 %v2071_v16, %v1032_v19 }
 0xb25   :  { %1036 = vrot.lane.b32.xlu0 %v1034_v15, %s2197_s0 }
 0xb85   :  { %v1074_v24 = vpop.permute.xlu1 %1073 }
 0xb86   :  { %v2516_v25 = vadd.f32 %v1074_v24, %v1066_v22 }
 0xb88   :  { %2072 = vtanh.f32 %v2516_v25 }
 0xb92   :  { %v2073_v27 = vpop.eup %2072 }
 0xb93   :  { %1079 = vrot.lane.b32.xlu1 %v2073_v27, %s2197_s0 }
 0xb97   :  { %v1037_v29 = vpop.permute.xlu0 %1036 }
 0xb98   :  { %v2521_v4 = vadd.f32 %v1037_v29, %v1029_v28 }
 0xb9a   :  { %2074 = vtanh.f32 %v2521_v4 }
 0xba4   :  { %v2075_v30 = vpop.eup %2074 }
 0xba5   :  { %1042 = vrot.lane.b32.xlu0 %v2075_v30, %s2197_s0 }
 0xc05   :  { %v1080_v14 = vpop.permute.xlu1 %1079 }
 0xc06   :  { %v1082_v26 = vmul.f32 %v2059_v32, %v1080_v14 }
 0xc08   :  { %v1083_v31 = vpack.c.bf16 %v1082_v26, %v1082_v26  ;;  %v1270_v26 = vrot.slane %v2516_v25, 6 }
 0xc0a   :  { %1910 = vmatmul.mubr.msk.bf16.vlgmr.msra.gmra.mrb[24].mxu0 %vm261_vm2, %v1083_v31  ;;  %1911 = vmatmul.mubr.msk.bf16.vlgmr.msra.gmra.mrb[24].mxu1 %vm261_vm2, %v1083_v31 }
 0xc0b   :  { %1173 = vmatpush1.bf16.msra.mxu0 %v2366_v5  ;;  %1204 = vmatprep.mubr.bf16.mxu0 %v2196_v0 }
 0xc0c   :  { %1174 = vmatprep.subr.bf16.mxu0 %v2368_v9  ;;  %1296 = vmatpush1.bf16.msra.mxu1 %v2263_v35 }
 0xc0d   :  { %1297 = vmatprep.subr.bf16.mxu1 %v2267_v37  ;;  %1327 = vmatprep.mubr.bf16.mxu1 %v2196_v0 }
 0xc0f   :  { %1175 = vmatpush1.bf16.msra.mxu0 %v2373_v11 }
 0xc10   :  { %1176 = vmatprep.subr.bf16.mxu0 %v2377_v8  ;;  %1298 = vmatpush1.bf16.msra.mxu1 %v2275_v39 }
 0xc11   :  { %1299 = vmatprep.subr.bf16.mxu1 %v2281_v41 }
 0xc13   :  { %1177 = vmatpush1.bf16.msra.mxu0 %v2383_v12 }
 0xc14   :  { %1178 = vmatprep.subr.bf16.mxu0 %v2386_v13  ;;  %1300 = vmatpush1.bf16.msra.mxu1 %v2287_v43 }
 0xc15   :  { %1301 = vmatprep.subr.bf16.mxu1 %v2295_v46 }
 0xc17   :  { %v1043_v35 = vpop.permute.xlu0 %1042  ;;  %1179 = vmatpush1.bf16.msra.mxu0 %v2391_v18 }
 0xc18   :  { %v1045_v37 = vmul.f32 %v2063_v53, %v1043_v35  ;;  %1336 = vmatprep.subr.bf16.mxu0 %v2261_v34  ;;  %1302 = vmatpush1.bf16.msra.mxu1 %v2299_v49 }
 0xc19   :  { %1380 = vmatprep.subr.bf16.mxu1 %v2361_v63 }
 0xc1a   :  { %v1046_v39 = vpack.c.bf16 %v1045_v37, %v1045_v37 }
 0xc1c   :  { %1912 = vmatmul.mubr.msk.bf16.vlgmr.msra.gmra.mrb[28].mxu0 %vm261_vm2, %v1046_v39 }
 0xc1d   :  { %1337 = vmatpush1.bf16.msra.mxu0 %v2265_v36  ;;  %1368 = vmatprep.mubr.bf16.mxu0 %v2196_v0 }
 0xc1e   :  { %1338 = vmatprep.subr.bf16.mxu0 %v2269_v38 }
 0xc21   :  { %1339 = vmatpush1.bf16.msra.mxu0 %v2277_v40 }
 0xc22   :  { %1340 = vmatprep.subr.bf16.mxu0 %v2283_v42 }
 0xc25   :  { %1341 = vmatpush1.bf16.msra.mxu0 %v2289_v44 }
 0xc26   :  { %1342 = vmatprep.subr.bf16.mxu0 %v2297_v47 }
 0xc29   :  { %1343 = vmatpush1.bf16.msra.mxu0 %v2301_v50 }
 0xc2a   :  { %1503 = vmatprep.subr.bf16.mxu0 %v2259_v33 }
 0xcdd   :  { %v1121_v34 = vpop.f32.mrb[24].mxu0  ;;  %v1162_v41 = vpop.f32.mrb[24].mxu1 }
 0xcde   :  { %v1123_v43 = vpop.f32.mrb[25].mxu0  ;;  %v1164_v36 = vpop.f32.mrb[25].mxu1  ;;  %v1249_v3 = vrot.slane %v1121_v34, 6 }
 0xcdf   :  { %v1250_v46 = vrot.slane %v1123_v43, 6  ;;  %v1125_v49 = vpop.f32.mrb[26].mxu0  ;;  %v1166_v10 = vpop.f32.mrb[26].mxu1 }
 0xce0   :  { %v1126_v38 = vpop.f32.mrb[27].mxu0  ;;  %v1167_v32 = vpop.f32.mrb[27].mxu1  ;;  %v1253_v59 = vadd.f32 %v1249_v3, %v2249_v17 }
 0xce1   :  { %v1254_v40 = vadd.f32 %v1250_v46, %v2252_v20  ;;  %v2147_v38 = vld [vmem:[#allocation2 + $0x34] ss:$16 sps:$4 sm:$0xff]   ;;  %v2148_v32 = vld [vmem:[#allocation2 + $0x30] ss:$16 sps:$4 sm:$0xff]  }
 0xce2   :  { %v1916_v61 = vmul.f32 -1.442695, %v1253_v59 }
 0xce3   :  { %v1917_v42 = vmul.f32 -1.442695, %v1254_v40  ;;  %v2149_v40 = vld [vmem:[#allocation2 + $0x54] ss:$16 sps:$4 sm:$0xff]  }
 0xce5   :  { %2076 = vpow2.f32 %v1917_v42  ;;  %v2151_v42 = vld [vmem:[#allocation2 + $0x74] ss:$16 sps:$4 sm:$0xff]  }
 0xcef   :  { %v2077_v44 = vpop.eup %2076  ;;  %v1206_v45 = vpop.f32.mrb[28].mxu0 }
 0xcf0   :  { %v1262_v47 = vadd.f32 1.0, %v2077_v44  ;;  %v1207_v48 = vadd.f32 %v1206_v45, %v1162_v41  ;;  %v1208_v50 = vpop.f32.mrb[29].mxu0  ;;  %v2152_v45 = vld [vmem:[#allocation2 + $0x1c] ss:$16 sps:$4 sm:$0xff]  }
 0xcf1   :  { %v1209_v7 = vadd.f32 %v1208_v50, %v1164_v36  ;;  %v1210_v33 = vpop.f32.mrb[30].mxu0  ;;  %v2609_v50 = vld [vmem:[#allocation2 + $0x78] ss:$16 sps:$4 sm:$0xff]  }
 0xcf2   :  { %2078 = vrcp.f32 %v1262_v47  ;;  %v1211_v52 = vpop.f32.mrb[31].mxu0  ;;  %v1213_v16 = vadd.f32 %v1207_v48, %v2348_v23  ;;  %v2600_v47 = vld [vmem:[#allocation2 + $0x5c] ss:$16 sps:$4 sm:$0xff]  }
 0xcf3   :  { %v1214_v53 = vadd.f32 %v1209_v7, %v2337_v57  ;;  %v2606_v48 = vld [vmem:[#allocation2 + $0x7c] ss:$16 sps:$4 sm:$0xff]  }
 0xcf4   :  { %v1913_v15 = vmul.f32 -1.442695, %v1213_v16 }
 0xcf5   :  { %v1914_v54 = vmul.f32 -1.442695, %v1214_v53 }
 0xcf7   :  { %2080 = vpow2.f32 %v1914_v54 }
 0xcfc   :  { %v2079_v55 = vpop.eup %2078 }
 0xcfd   :  { %v1267_v58 = vmul.f32 2.0, %v2079_v55 }
 0xcff   :  { %v1918_v1 = vadd.f32 -1.0, %v1267_v58 }
 0xd01   :  { %v2081_v60 = vpop.eup %2080  ;;  %1274 = vrot.lane.b32.xlu1 %v1918_v1, %s2197_s0 }
 0xd02   :  { %v1222_v56 = vadd.f32 1.0, %v2081_v60 }
 0xd04   :  { %2082 = vrcp.f32 %v1222_v56 }
 0xd05   :  { %2084 = vpow2.f32 %v1916_v61 }
 0xd0e   :  { %v2558_v62 = vpop.eup %2082 }
 0xd0f   :  { %v1227_v51 = vmul.f32 2.0, %v2558_v62  ;;  %v2085_v6 = vpop.eup %2084 }
 0xd10   :  { %v1261_v19 = vadd.f32 1.0, %v2085_v6 }
 0xd11   :  { %v1915_v2 = vadd.f32 -1.0, %v1227_v51 }
 0xd12   :  { %2086 = vrcp.f32 %v1261_v19 }
 0xd13   :  { %1231 = vrot.lane.b32.xlu0 %v1915_v2, %s2197_s0  ;;  %2088 = vpow2.f32 %v1913_v15 }
 0xd1c   :  { %v2087_v21 = vpop.eup %2086 }
 0xd1d   :  { %v2089_v24 = vpop.eup %2088  ;;  %v1272_v31 = vmul.f32 %v2087_v21, %v1270_v26 }
 0xd1e   :  { %v1221_v28 = vadd.f32 1.0, %v2089_v24 }
 0xd20   :  { %2090 = vrcp.f32 %v1221_v28 }
 0xd2a   :  { %v2091_v29 = vpop.eup %2090 }
 0xd2b   :  { %v1229_v34 = vmul.f32 %v2091_v29, %v2521_v4  ;;  %v2146_v4 = vld [vmem:[#allocation2 + $0x10] ss:$16 sps:$4 sm:$0xff]  }
 0xd73   :  { %v1275_v22 = vpop.permute.xlu1 %1274 }
 0xd74   :  { %v1277_v27 = vmul.f32 %v2087_v21, %v1275_v22 }
 0xd76   :  { %1279 = vrot.lane.b32.xlu1 %v1277_v27, %s2197_s0 }
 0xd85   :  { %v1232_v30 = vpop.permute.xlu0 %1231 }
 0xd86   :  { %v1234_v14 = vmul.f32 %v2091_v29, %v1232_v30 }
 0xd88   :  { %1236 = vrot.lane.b32.xlu0 %v1234_v14, %s2197_s0 }
 0xde8   :  { %v1280_v35 = vpop.permute.xlu1 %1279 }
 0xde9   :  { %v2567_v37 = vadd.f32 %v1280_v35, %v1272_v31 }
 0xdeb   :  { %2092 = vtanh.f32 %v2567_v37 }
 0xdf5   :  { %v2093_v39 = vpop.eup %2092 }
 0xdf6   :  { %1285 = vrot.lane.b32.xlu1 %v2093_v39, %s2197_s0 }
 0xdfa   :  { %v1237_v41 = vpop.permute.xlu0 %1236 }
 0xdfb   :  { %v2572_v43 = vadd.f32 %v1237_v41, %v1229_v34 }
 0xdfd   :  { %2094 = vtanh.f32 %v2572_v43 }
 0xe07   :  { %v2095_v36 = vpop.eup %2094 }
 0xe08   :  { %1242 = vrot.lane.b32.xlu0 %v2095_v36, %s2197_s0 }
 0xe68   :  { %v1286_v25 = vpop.permute.xlu1 %1285 }
 0xe69   :  { %v1288_v46 = vmul.f32 %v2079_v55, %v1286_v25 }
 0xe6b   :  { %v1289_v49 = vpack.c.bf16 %v1288_v46, %v1288_v46 }
 0xe6d   :  { %v1291_v10 = vrot.slane %v1289_v49, 1 }
 0xe6f   :  { %1919 = vmatmul.mubr.msk.bf16.vlgmr.msra.gmra.mrb[28].mxu1 %vm261_vm2, %v1291_v10  ;;  %1920 = vmatmul.mubr.msk.bf16.vlgmr.msra.gmra.mrb[32].mxu0 %vm261_vm2, %v1291_v10 }
 0xe70   :  { %1381 = vmatpush1.bf16.msra.mxu1 %v2366_v5  ;;  %1412 = vmatprep.mubr.bf16.mxu1 %v2196_v0  ;;  %v2150_v5 = vld [vmem:[#allocation2 + $0x50] ss:$16 sps:$4 sm:$0xff]  }
 0xe71   :  { %1382 = vmatprep.subr.bf16.mxu1 %v2368_v9  ;;  %1504 = vmatpush1.bf16.msra.mxu0 %v2146_v4 }
 0xe72   :  { %1505 = vmatprep.subr.bf16.mxu0 %v2147_v38  ;;  %1535 = vmatprep.mubr.bf16.mxu0 %v2196_v0 }
 0xe74   :  { %1383 = vmatpush1.bf16.msra.mxu1 %v2373_v11 }
 0xe75   :  { %1384 = vmatprep.subr.bf16.mxu1 %v2377_v8  ;;  %1506 = vmatpush1.bf16.msra.mxu0 %v2148_v32  ;;  %v2153_v8 = vld [vmem:[#allocation2 + $0x70] ss:$16 sps:$4 sm:$0xff]  }
 0xe76   :  { %1507 = vmatprep.subr.bf16.mxu0 %v2149_v40 }
 0xe78   :  { %1385 = vmatpush1.bf16.msra.mxu1 %v2383_v12  ;;  %v2590_v12 = vld [vmem:[#allocation2 + $0x18] ss:$16 sps:$4 sm:$0xff]  }
 0xe79   :  { %1386 = vmatprep.subr.bf16.mxu1 %v2386_v13  ;;  %1508 = vmatpush1.bf16.msra.mxu0 %v2150_v5  ;;  %v2594_v13 = vld [vmem:[#allocation2 + $0x3c] ss:$16 sps:$4 sm:$0xff]  }
 0xe7a   :  { %v1243_v9 = vpop.permute.xlu0 %1242  ;;  %1509 = vmatprep.subr.bf16.mxu0 %v2151_v42 }
 0xe7b   :  { %v1245_v44 = vmul.f32 %v2558_v62, %v1243_v9  ;;  %v1478_v9 = vrot.slane %v2567_v37, 6 }
 0xe7c   :  { %1387 = vmatpush1.bf16.msra.mxu1 %v2391_v18  ;;  %v2597_v18 = vld [vmem:[#allocation2 + $0x38] ss:$16 sps:$4 sm:$0xff]  }
 0xe7d   :  { %v1246_v11 = vpack.c.bf16 %v1245_v44, %v1245_v44  ;;  %1544 = vmatprep.subr.bf16.mxu1 %v2152_v45  ;;  %1510 = vmatpush1.bf16.msra.mxu0 %v2153_v8 }
 0xe7e   :  { %1588 = vmatprep.subr.bf16.mxu0 %v2361_v63  ;;  %v2603_v63 = vld [vmem:[#allocation2 + $0x58] ss:$16 sps:$4 sm:$0xff]  }
 0xe7f   :  { %1921 = vmatmul.mubr.msk.bf16.vlgmr.msra.gmra.mrb[32].mxu1 %vm261_vm2, %v1246_v11 }
 0xe80   :  { %1545 = vmatpush1.bf16.msra.mxu1 %v2590_v12  ;;  %1576 = vmatprep.mubr.bf16.mxu1 %v2196_v0 }
 0xe81   :  { %1546 = vmatprep.subr.bf16.mxu1 %v2594_v13 }
 0xe84   :  { %1547 = vmatpush1.bf16.msra.mxu1 %v2597_v18 }
 0xe85   :  { %1548 = vmatprep.subr.bf16.mxu1 %v2600_v47 }
 0xe88   :  { %1549 = vmatpush1.bf16.msra.mxu1 %v2603_v63 }
 0xe89   :  { %1550 = vmatprep.subr.bf16.mxu1 %v2606_v48 }
 0xe8c   :  { %1551 = vmatpush1.bf16.msra.mxu1 %v2609_v50 }
 0xe8d   :  { %1711 = vmatprep.subr.bf16.mxu1 %v2152_v45 }
 0xf42   :  { %v1329_v7 = vpop.f32.mrb[28].mxu1  ;;  %v1370_v33 = vpop.f32.mrb[32].mxu0 }
 0xf43   :  { %v1331_v52 = vpop.f32.mrb[29].mxu1  ;;  %v1372_v53 = vpop.f32.mrb[33].mxu0  ;;  %v1457_v31 = vrot.slane %v1329_v7, 4 }
 0xf44   :  { %v1458_v54 = vrot.slane %v1331_v52, 4  ;;  %v1333_v55 = vpop.f32.mrb[30].mxu1  ;;  %v1374_v58 = vpop.f32.mrb[34].mxu0 }
 0xf45   :  { %v1334_v1 = vpop.f32.mrb[31].mxu1  ;;  %v1375_v60 = vpop.f32.mrb[35].mxu0  ;;  %v1461_v35 = vadd.f32 %v1457_v31, %v2249_v17  ;;  %v2161_v58 = vld [vmem:[#allocation2 + $0x90] ss:$16 sps:$4 sm:$0xff]  }
 0xf46   :  { %v1462_v56 = vadd.f32 %v1458_v54, %v2252_v20  ;;  %v2163_v1 = vld [vmem:[#allocation2 + $0xb0] ss:$16 sps:$4 sm:$0xff]   ;;  %v2164_v60 = vld [vmem:[#allocation2 + $0xd4] ss:$16 sps:$4 sm:$0xff]  }
 0xf47   :  { %v1925_v39 = vmul.f32 -1.442695, %v1461_v35 }
 0xf48   :  { %v1926_v62 = vmul.f32 -1.442695, %v1462_v56  ;;  %v2165_v56 = vld [vmem:[#allocation2 + $0xd0] ss:$16 sps:$4 sm:$0xff]  }
 0xf4a   :  { %2096 = vpow2.f32 %v1926_v62 }
 0xf52   :  { %v1414_v51 = vpop.f32.mrb[32].mxu1 }
 0xf53   :  { %v1415_v2 = vadd.f32 %v1414_v51, %v1370_v33  ;;  %v1416_v3 = vpop.f32.mrb[33].mxu1 }
 0xf54   :  { %v2097_v59 = vpop.eup %2096  ;;  %v1417_v61 = vadd.f32 %v1416_v3, %v1372_v53  ;;  %v1418_v6 = vpop.f32.mrb[34].mxu1  ;;  %v2168_v3 = vld [vmem:[#allocation2 + $0x94] ss:$16 sps:$4 sm:$0xff]  }
 0xf55   :  { %v1470_v16 = vadd.f32 1.0, %v2097_v59  ;;  %v1419_v19 = vpop.f32.mrb[35].mxu1  ;;  %v1421_v34 = vadd.f32 %v1415_v2, %v2348_v23  ;;  %v2166_v2 = vld [vmem:[#allocation2 + $0xf4] ss:$16 sps:$4 sm:$0xff]  }
 0xf56   :  { %v1422_v15 = vadd.f32 %v1417_v61, %v2337_v57 }
 0xf57   :  { %2098 = vrcp.f32 %v1470_v16  ;;  %v1922_v36 = vmul.f32 -1.442695, %v1421_v34 }
 0xf58   :  { %v1923_v21 = vmul.f32 -1.442695, %v1422_v15 }
 0xf5a   :  { %2100 = vpow2.f32 %v1923_v21 }
 0xf61   :  { %v2099_v22 = vpop.eup %2098 }
 0xf62   :  { %v1475_v24 = vmul.f32 2.0, %v2099_v22 }
 0xf64   :  { %v2101_v27 = vpop.eup %2100  ;;  %v1927_v28 = vadd.f32 -1.0, %v1475_v24 }
 0xf65   :  { %v1430_v29 = vadd.f32 1.0, %v2101_v27 }
 0xf66   :  { %1482 = vrot.lane.b32.xlu1 %v1927_v28, %s2197_s0 }
 0xf67   :  { %2102 = vrcp.f32 %v1430_v29 }
 0xf68   :  { %2104 = vpow2.f32 %v1925_v39 }
 0xf69   :  { %2106 = vpow2.f32 %v1922_v36 }
 0xf71   :  { %v2103_v30 = vpop.eup %2102 }
 0xf72   :  { %v1435_v14 = vmul.f32 2.0, %v2103_v30  ;;  %v2105_v41 = vpop.eup %2104 }
 0xf73   :  { %v1469_v25 = vadd.f32 1.0, %v2105_v41  ;;  %v2107_v46 = vpop.eup %2106 }
 0xf74   :  { %v1924_v26 = vadd.f32 -1.0, %v1435_v14  ;;  %v1429_v38 = vadd.f32 1.0, %v2107_v46 }
 0xf75   :  { %2108 = vrcp.f32 %v1469_v25 }
 0xf76   :  { %1439 = vrot.lane.b32.xlu0 %v1924_v26, %s2197_s0  ;;  %2110 = vrcp.f32 %v1429_v38 }
 0xf7f   :  { %v2109_v49 = vpop.eup %2108 }
 0xf80   :  { %v2111_v32 = vpop.eup %2110  ;;  %v1480_v42 = vmul.f32 %v2109_v49, %v1478_v9 }
 0xf81   :  { %v1437_v8 = vmul.f32 %v2111_v32, %v2572_v43  ;;  %v2162_v43 = vld [vmem:[#allocation2 + $0xb4] ss:$16 sps:$4 sm:$0xff]  }
 0xfd8   :  { %v1483_v10 = vpop.permute.xlu1 %1482 }
 0xfd9   :  { %v1485_v4 = vmul.f32 %v2109_v49, %v1483_v10 }
 0xfdb   :  { %1487 = vrot.lane.b32.xlu1 %v1485_v4, %s2197_s0 }
 0xfe8   :  { %v1440_v40 = vpop.permute.xlu0 %1439 }
 0xfe9   :  { %v1442_v5 = vmul.f32 %v2111_v32, %v1440_v40 }
 0xfeb   :  { %1444 = vrot.lane.b32.xlu0 %v1442_v5, %s2197_s0 }
0x104d   :  { %v1488_v44 = vpop.permute.xlu1 %1487 }
0x104e   :  { %v2621_v11 = vadd.f32 %v1488_v44, %v1480_v42 }
0x1050   :  { %2112 = vtanh.f32 %v2621_v11 }
0x105a   :  { %v2113_v45 = vpop.eup %2112 }
0x105b   :  { %1493 = vrot.lane.b32.xlu1 %v2113_v45, %s2197_s0 }
0x105d   :  { %v1445_v7 = vpop.permute.xlu0 %1444 }
0x105e   :  { %v2626_v33 = vadd.f32 %v1445_v7, %v1437_v8 }
0x1060   :  { %2114 = vtanh.f32 %v2626_v33 }
0x106a   :  { %v2115_v52 = vpop.eup %2114 }
0x106b   :  { %1450 = vrot.lane.b32.xlu0 %v2115_v52, %s2197_s0  ;;  %v1686_v52 = vrot.slane %v2621_v11, 6 }
0x10cd   :  { %v1494_v37 = vpop.permute.xlu1 %1493 }
0x10ce   :  { %v1496_v53 = vmul.f32 %v2099_v22, %v1494_v37 }
0x10d0   :  { %v1497_v54 = vpack.c.bf16 %v1496_v53, %v1496_v53 }
0x10d2   :  { %v1499_v55 = vrot.slane %v1497_v54, 2 }
0x10d4   :  { %1928 = vmatmul.mubr.msk.bf16.vlgmr.msra.gmra.mrb[36].mxu0 %vm261_vm2, %v1499_v55  ;;  %1929 = vmatmul.mubr.msk.bf16.vlgmr.msra.gmra.mrb[36].mxu1 %vm261_vm2, %v1499_v55 }
0x10d5   :  { %1589 = vmatpush1.bf16.msra.mxu0 %v2161_v58  ;;  %1620 = vmatprep.mubr.bf16.mxu0 %v2196_v0 }
0x10d6   :  { %1590 = vmatprep.subr.bf16.mxu0 %v2162_v43  ;;  %1712 = vmatpush1.bf16.msra.mxu1 %v2590_v12  ;;  %v2167_v12 = vld [vmem:[#allocation2 + $0xf0] ss:$16 sps:$4 sm:$0xff]  }
0x10d7   :  { %1713 = vmatprep.subr.bf16.mxu1 %v2594_v13  ;;  %1743 = vmatprep.mubr.bf16.mxu1 %v2196_v0 }
0x10d9   :  { %1591 = vmatpush1.bf16.msra.mxu0 %v2163_v1 }
0x10da   :  { %1592 = vmatprep.subr.bf16.mxu0 %v2164_v60  ;;  %1714 = vmatpush1.bf16.msra.mxu1 %v2597_v18 }
0x10db   :  { %1715 = vmatprep.subr.bf16.mxu1 %v2600_v47 }
0x10dd   :  { %1593 = vmatpush1.bf16.msra.mxu0 %v2165_v56  ;;  %v1451_v62 = vpop.permute.xlu0 %1450 }
0x10de   :  { %v1453_v51 = vmul.f32 %v2103_v30, %v1451_v62  ;;  %1594 = vmatprep.subr.bf16.mxu0 %v2166_v2  ;;  %1716 = vmatpush1.bf16.msra.mxu1 %v2603_v63 }
0x10df   :  { %1717 = vmatprep.subr.bf16.mxu1 %v2606_v48 }
0x10e0   :  { %v1454_v13 = vpack.c.bf16 %v1453_v51, %v1453_v51 }
0x10e1   :  { %1595 = vmatpush1.bf16.msra.mxu0 %v2167_v12 }
0x10e2   :  { %1718 = vmatpush1.bf16.msra.mxu1 %v2609_v50  ;;  %1755 = vmatprep.subr.bf16.mxu0 %v2168_v3 }
0x10e4   :  { %1930 = vmatmul.mubr.msk.bf16.vlgmr.msra.gmra.mrb[40].mxu0 %vm261_vm2, %v1454_v13 }
0x10e5   :  { %1756 = vmatpush1.bf16.msra.mxu0 %v2161_v58  ;;  %1787 = vmatprep.mubr.bf16.mxu0 %v2196_v0 }
0x10e6   :  { %1757 = vmatprep.subr.bf16.mxu0 %v2162_v43 }
0x10e9   :  { %1758 = vmatpush1.bf16.msra.mxu0 %v2163_v1 }
0x10ea   :  { %1759 = vmatprep.subr.bf16.mxu0 %v2164_v60 }
0x10ed   :  { %1760 = vmatpush1.bf16.msra.mxu0 %v2165_v56 }
0x10ee   :  { %1761 = vmatprep.subr.bf16.mxu0 %v2166_v2 }
0x10f1   :  { %1762 = vmatpush1.bf16.msra.mxu0 %v2167_v12 }
0x11a7   :  { %v1537_v18 = vpop.f32.mrb[36].mxu0  ;;  %v1578_v47 = vpop.f32.mrb[36].mxu1 }
0x11a8   :  { %v1539_v63 = vpop.f32.mrb[37].mxu0  ;;  %v1580_v48 = vpop.f32.mrb[37].mxu1  ;;  %v1665_v46 = vrot.slane %v1537_v18, 2 }
0x11a9   :  { %v1666_v59 = vrot.slane %v1539_v63, 2  ;;  %v1541_v61 = vpop.f32.mrb[38].mxu0  ;;  %v1582_v50 = vpop.f32.mrb[38].mxu1 }
0x11aa   :  { %v1542_v6 = vpop.f32.mrb[39].mxu0  ;;  %v1583_v16 = vpop.f32.mrb[39].mxu1  ;;  %v1669_v49 = vadd.f32 %v1665_v46, %v2249_v17  ;;  %v58_v46 = vld [vmem:[%s2673_s2 + $0x3] ss:$0 sm:$0xff] }
0x11ab   :  { %v1670_v19 = vadd.f32 %v1666_v59, %v2252_v20 }
0x11ac   :  { %v1934_v10 = vmul.f32 -1.442695, %v1669_v49 }
0x11ad   :  { %v1935_v15 = vmul.f32 -1.442695, %v1670_v19 }
0x11af   :  { %2116 = vpow2.f32 %v1935_v15 }
0x11b7   :  { %v1622_v0 = vpop.f32.mrb[40].mxu0 }
0x11b8   :  { %v1623_v21 = vadd.f32 %v1622_v0, %v1578_v47  ;;  %v1624_v22 = vpop.f32.mrb[41].mxu0 }
0x11b9   :  { %v2117_v24 = vpop.eup %2116  ;;  %v1625_v27 = vadd.f32 %v1624_v22, %v1580_v48  ;;  %v1626_v28 = vpop.f32.mrb[42].mxu0 }
0x11ba   :  { %v1678_v29 = vadd.f32 1.0, %v2117_v24  ;;  %v1627_v30 = vpop.f32.mrb[43].mxu0  ;;  %v1629_v4 = vadd.f32 %v1623_v21, %v2348_v23 }
0x11bb   :  { %v1630_v14 = vadd.f32 %v1625_v27, %v2337_v57 }
0x11bc   :  { %2118 = vrcp.f32 %v1678_v29  ;;  %v1931_v32 = vmul.f32 -1.442695, %v1629_v4 }
0x11bd   :  { %v1932_v26 = vmul.f32 -1.442695, %v1630_v14 }
0x11bf   :  { %2120 = vpow2.f32 %v1932_v26 }
0x11c6   :  { %v2119_v31 = vpop.eup %2118 }
0x11c7   :  { %v1683_v35 = vmul.f32 2.0, %v2119_v31 }
0x11c9   :  { %v2121_v39 = vpop.eup %2120  ;;  %v1936_v34 = vadd.f32 -1.0, %v1683_v35 }
0x11ca   :  { %v1638_v20 = vadd.f32 1.0, %v2121_v39 }
0x11cb   :  { %1690 = vrot.lane.b32.xlu1 %v1936_v34, %s2197_s0 }
0x11cc   :  { %2122 = vrcp.f32 %v1638_v20 }
0x11cd   :  { %2124 = vpow2.f32 %v1934_v10 }
0x11ce   :  { %2126 = vpow2.f32 %v1931_v32 }
0x11d6   :  { %v2123_v41 = vpop.eup %2122 }
0x11d7   :  { %v1643_v36 = vmul.f32 2.0, %v2123_v41  ;;  %v2125_v38 = vpop.eup %2124 }
0x11d8   :  { %v1677_v40 = vadd.f32 1.0, %v2125_v38  ;;  %v2127_v5 = vpop.eup %2126 }
0x11d9   :  { %v1933_v25 = vadd.f32 -1.0, %v1643_v36  ;;  %v1637_v45 = vadd.f32 1.0, %v2127_v5 }
0x11da   :  { %2128 = vrcp.f32 %v1677_v40 }
0x11db   :  { %1647 = vrot.lane.b32.xlu0 %v1933_v25, %s2197_s0  ;;  %2130 = vrcp.f32 %v1637_v45 }
0x11e4   :  { %v2129_v9 = vpop.eup %2128 }
0x11e5   :  { %v2131_v8 = vpop.eup %2130  ;;  %v1688_v37 = vmul.f32 %v2129_v9, %v1686_v52 }
0x11e6   :  { %v1645_v58 = vmul.f32 %v2131_v8, %v2626_v33 }
0x123d   :  { %v1691_v42 = vpop.permute.xlu1 %1690 }
0x123e   :  { %v1693_v44 = vmul.f32 %v2129_v9, %v1691_v42 }
0x1240   :  { %1695 = vrot.lane.b32.xlu1 %v1693_v44, %s2197_s0 }
0x124d   :  { %v1648_v7 = vpop.permute.xlu0 %1647 }
0x124e   :  { %v1650_v17 = vmul.f32 %v2131_v8, %v1648_v7 }
0x1250   :  { %1652 = vrot.lane.b32.xlu0 %v1650_v17, %s2197_s0 }
0x12b2   :  { %v1696_v53 = vpop.permute.xlu1 %1695 }
0x12b3   :  { %v1698_v54 = vadd.f32 %v1696_v53, %v1688_v37 }
0x12b5   :  { %2132 = vtanh.f32 %v1698_v54 }
0x12bf   :  { %v2133_v55 = vpop.eup %2132 }
0x12c0   :  { %1701 = vrot.lane.b32.xlu1 %v2133_v55, %s2197_s0 }
0x12c2   :  { %v1653_v43 = vpop.permute.xlu0 %1652 }
0x12c3   :  { %v1655_v1 = vadd.f32 %v1653_v43, %v1645_v58 }
0x12c5   :  { %2134 = vtanh.f32 %v1655_v1 }
0x12cf   :  { %v2135_v60 = vpop.eup %2134 }
0x12d0   :  { %1658 = vrot.lane.b32.xlu0 %v2135_v60, %s2197_s0 }
0x1332   :  { %v1702_v56 = vpop.permute.xlu1 %1701 }
0x1333   :  { %v1704_v62 = vmul.f32 %v2119_v31, %v1702_v56 }
0x1335   :  { %v1705_v51 = vpack.c.bf16 %v1704_v62, %v1704_v62 }
0x1337   :  { %v1707_v2 = vrot.slane %v1705_v51, 3 }
0x1339   :  { %1937 = vmatmul.mubr.msk.bf16.vlgmr.msra.gmra.mrb[40].mxu1 %vm261_vm2, %v1707_v2 }
0x1342   :  { %v1659_v11 = vpop.permute.xlu0 %1658 }
0x1343   :  { %v1661_v12 = vmul.f32 %v2123_v41, %v1659_v11 }
0x1345   :  { %v1662_v13 = vpack.c.bf16 %v1661_v12, %v1661_v12 }
0x1347   :  { %1938 = vmatmul.mubr.msk.bf16.vlgmr.msra.gmra.mrb[44].mxu0 %vm261_vm2, %v1662_v13 }
0x140c   :  { %v1745_v3 = vpop.f32.mrb[40].mxu1 }
0x140d   :  { %v1747_v18 = vpop.f32.mrb[41].mxu1 }
0x140e   :  { %v1749_v33 = vpop.f32.mrb[42].mxu1 }
0x140f   :  { %v1750_v47 = vpop.f32.mrb[43].mxu1 }
0x141a   :  { %v1789_v63 = vpop.f32.mrb[44].mxu0 }
0x141b   :  { %v1790_v48 = vadd.f32 %v1789_v63, %v1745_v3  ;;  %v1791_v59 = vpop.f32.mrb[45].mxu0 }
0x141c   :  { %v1792_v61 = vadd.f32 %v1791_v59, %v1747_v18  ;;  %v1793_v50 = vpop.f32.mrb[46].mxu0 }
0x141d   :  { %v1794_v6 = vpop.f32.mrb[47].mxu0  ;;  %v1796_v27 = vadd.f32 %v1790_v48, %v2348_v23  ;;  %v57_v23 = vld [vmem:[%s2673_s2 + $0x2] ss:$0 sm:$0xff] }
0x141e   :  { %v1797_v16 = vadd.f32 %v1792_v61, %v2337_v57 }
0x141f   :  { %v1939_v28 = vmul.f32 -1.442695, %v1796_v27 }
0x1420   :  { %v1940_v19 = vmul.f32 -1.442695, %v1797_v16 }
0x1422   :  { %2136 = vpow2.f32 %v1940_v19 }
0x142c   :  { %v2137_v15 = vpop.eup %2136 }
0x142d   :  { %v1805_v0 = vadd.f32 1.0, %v2137_v15 }
0x142f   :  { %2138 = vrcp.f32 %v1805_v0 }
0x1430   :  { %2140 = vpow2.f32 %v1939_v28 }
0x1439   :  { %v2139_v21 = vpop.eup %2138 }
0x143a   :  { %v1810_v22 = vmul.f32 2.0, %v2139_v21  ;;  %v2141_v29 = vpop.eup %2140 }
0x143b   :  { %v1804_v30 = vadd.f32 1.0, %v2141_v29 }
0x143c   :  { %v1941_v24 = vadd.f32 -1.0, %v1810_v22 }
0x143d   :  { %2142 = vrcp.f32 %v1804_v30 }
0x143e   :  { %1814 = vrot.lane.b32.xlu1 %v1941_v24, %s2197_s0 }
0x1447   :  { %v2143_v14 = vpop.eup %2142 }
0x1448   :  { %v1812_v31 = vmul.f32 %v2143_v14, %v1655_v1 }
0x14b0   :  { %v1815_v26 = vpop.permute.xlu1 %1814 }
0x14b1   :  { %v1817_v57 = vmul.f32 %v2143_v14, %v1815_v26 }
0x14b3   :  { %1819 = vrot.lane.b32.xlu0 %v1817_v57, %s2197_s0 }
0x1525   :  { %v1820_v35 = vpop.permute.xlu0 %1819 }
0x1526   :  { %v1822_v39 = vadd.f32 %v1820_v35, %v1812_v31 }
0x1528   :  { %2144 = vtanh.f32 %v1822_v39 }
0x1532   :  { %v2145_v34 = vpop.eup %2144 }
0x1533   :  { %1825 = vrot.lane.b32.xlu1 %v2145_v34, %s2197_s0 }
0x15a5   :  { %v1826_v20 = vpop.permute.xlu1 %1825 }
0x15a6   :  { %v1828_v41 = vmul.f32 %v2139_v21, %v1826_v20 }
0x15a8   :  { %v1829_v36 = vmul.f32 %v1828_v41, %v57_v23 }
0x15aa   :  { %v1831_v25 = vsel %vm1830_vm3, %v1829_v36, 0.0 }
0x15ab   :  { %1832 = vadd.xlane.f32.xlu0 %v1831_v25 }
0x1638   :  { %v1833_v49 = vpop.xlane.xlu0 %1832 }
0x1639   :  { %v1834_v10 = vadd.f32 %v1833_v49, %v58_v46 }
0x163b   :  { %1836 = vst.msk [vmem:[%s2674_s3] sm:$0x3] %vm1835_vm4, %v1834_v10 }
0x163c   :  { %1841 = vsyncpa [#allocation3], 1 }

</bundles_post_ra>
